<compile_context>
chip_gen: v7x
topology: tpu7x:2x2x1
jax: 0.10.0
libtpu: 0.0.40
codegen_flags: <defaults>
</compile_context>

<pallas_src>
import jax
import jax.numpy as jnp
import numpy as np
from jax.experimental import pallas as pl
from jax.experimental.pallas import tpu as pltpu

# ----------------------------- problem sizes --------------------------------
M = 2          # number of ensemble models
V = 32         # vocab size
E = 16         # embedding dim
H = 32         # decoder hidden dim (== encoder output dim for dot attention)
L = 2          # decoder LSTM layers
S = 8          # source length
BEAM = 4       # beam size
EOS, UNK = 2, 3
WORD_REWARD, UNK_REWARD = 0.5, -0.25

# ------------- packed parameter slab layout (per model, rows x 128) ----------
ROW_EMBED = 0          # V  rows, lanes 0:E     embedding table
ROW_W0E = 32           # E  rows, lanes 0:4H    w_ih0^T (embedding columns)
ROW_W0FH = 48          # 2H rows, lanes 0:4H    [w_ih0^T feed cols ; w_hh0^T]
ROW_W1X = 112          # H  rows, lanes 0:4H    w_ih1^T
ROW_W1H = 144          # H  rows, lanes 0:4H    w_hh1^T
ROW_WC = 176           # H  rows, lanes 0:H     w_att^T (context half)
ROW_WH = 208           # H  rows, lanes 0:H     w_att^T (hidden half)
ROW_WO = 240           # H  rows, lanes 0:V     w_out^T
ROW_BIAS = 272         # 4 rows: b0, b1, b_att, b_out (one per row)
PR = 280

# -------------- packed per-step dynamic slab layout (per model) --------------
DROW_FH = 0            # [input_feed | prev_h[0]]  lanes 0:2H
DROW_H1 = 1            # prev_h[1]                 lanes 0:H
DROW_C0 = 2            # prev_c[0]
DROW_C1 = 3            # prev_c[1]
DROW_ENC = 8           # S rows, lanes 0:H         encoder output
DROW_ENCT = 16         # H rows, lanes 0:S         encoder output transposed
DR = 48

# ---------------------------- packed output layout ---------------------------
OROW_ATTN, OROW_SCORE, OROW_TOKEN = 0, 1, 2
OROW_STATE = 8         # + 2*m : row0 = [h0|c0|h1|c1] (4*H = 128 lanes), row1 = input_feed
OR = OROW_STATE + 2 * M   # 12 rows


# ----------------------------- fused ensemble kernel -------------------------
def _decoder_step_ensemble_kernel(tok_ref, params_ref, dyn_ref, out_ref):
    out_ref[...] = jnp.zeros_like(out_ref)

    tok = tok_ref[0, 0]                                            # SMEM scalar
    vocab_iota = jax.lax.broadcasted_iota(jnp.int32, (1, V), 1)
    onehot = (vocab_iota == tok).astype(jnp.float32)               # (1, V)

    sum_logp = jnp.zeros((1, V), jnp.float32)
    sum_attn = jnp.zeros((1, S), jnp.float32)

    for m in range(M):                                             # static unroll
        def w(row, nrows, ncols):
            return params_ref[m, row:row + nrows, 0:ncols]

        def b(row, ncols):
            return params_ref[m, row:row + 1, 0:ncols]

        # embedding lookup as one-hot matmul (gather stays in-kernel)
        emb = jnp.dot(onehot, w(ROW_EMBED, V, E),
                      preferred_element_type=jnp.float32)          # (1, E)

        def lstm(gates, c_prev):
            sg = jax.nn.sigmoid(gates)                             # full 128-lane EUP
            tg = jnp.tanh(gates)
            c_new = sg[:, H:2 * H] * c_prev + sg[:, 0:H] * tg[:, 2 * H:3 * H]
            h_new = sg[:, 3 * H:4 * H] * jnp.tanh(c_new)
            return h_new, c_new

        # ---- layer 0: input = [embedding | input_feed], recurrent = prev_h[0]
        fh0 = dyn_ref[m, DROW_FH:DROW_FH + 1, 0:2 * H]             # (1, 2H)
        g0 = (jnp.dot(emb, w(ROW_W0E, E, 4 * H), preferred_element_type=jnp.float32)
              + jnp.dot(fh0, w(ROW_W0FH, 2 * H, 4 * H), preferred_element_type=jnp.float32)
              + b(ROW_BIAS + 0, 4 * H))
        h0, c0 = lstm(g0, dyn_ref[m, DROW_C0:DROW_C0 + 1, 0:H])

        # ---- layer 1
        h1p = dyn_ref[m, DROW_H1:DROW_H1 + 1, 0:H]
        g1 = (jnp.dot(h0, w(ROW_W1X, H, 4 * H), preferred_element_type=jnp.float32)
              + jnp.dot(h1p, w(ROW_W1H, H, 4 * H), preferred_element_type=jnp.float32)
              + b(ROW_BIAS + 1, 4 * H))
        h1, c1 = lstm(g1, dyn_ref[m, DROW_C1:DROW_C1 + 1, 0:H])

        # ---- dot attention over encoder output (src_length_masking disabled)
        enc = dyn_ref[m, DROW_ENC:DROW_ENC + S, 0:H]               # (S, H)
        enc_t = dyn_ref[m, DROW_ENCT:DROW_ENCT + H, 0:S]           # (H, S) host-transposed
        scores = jnp.dot(h1, enc_t, preferred_element_type=jnp.float32)   # (1, S)
        scores = scores - jnp.max(scores, axis=1, keepdims=True)
        e = jnp.exp(scores)
        attn = e * pl.reciprocal(jnp.sum(e, axis=1, keepdims=True), approx=True)
        ctx = jnp.dot(attn, enc, preferred_element_type=jnp.float32)      # (1, H)

        # ---- combined output state (= next input_feed)
        comb = jnp.tanh(
            jnp.dot(ctx, w(ROW_WC, H, H), preferred_element_type=jnp.float32)
            + jnp.dot(h1, w(ROW_WH, H, H), preferred_element_type=jnp.float32)
            + b(ROW_BIAS + 2, H))

        logits = (jnp.dot(comb, w(ROW_WO, H, V), preferred_element_type=jnp.float32)
                  + b(ROW_BIAS + 3, V))
        z = logits - jnp.max(logits, axis=1, keepdims=True)
        logp = z - jnp.log(jnp.sum(jnp.exp(z), axis=1, keepdims=True))

        sum_logp = sum_logp + logp
        sum_attn = sum_attn + attn

        # module ordering: h0, c0, h1, c1 packed into one 128-lane row; feed next row
        base = OROW_STATE + 2 * m
        out_ref[base:base + 1, 0:H] = h0
        out_ref[base:base + 1, H:2 * H] = c0
        out_ref[base:base + 1, 2 * H:3 * H] = h1
        out_ref[base:base + 1, 3 * H:4 * H] = c1
        out_ref[base + 1:base + 2, 0:H] = comb

    avg_logp = sum_logp * (1.0 / M)
    out_ref[OROW_ATTN:OROW_ATTN + 1, 0:S] = sum_attn * (1.0 / M)

    # word rewards built in-kernel from constants (as in module __init__)
    wr = jnp.full((1, V), WORD_REWARD, jnp.float32)
    wr = jnp.where(vocab_iota == EOS, 0.0, wr)
    wr = jnp.where(vocab_iota == UNK, WORD_REWARD + UNK_REWARD, wr)

    # top-k (beam) with lowest-index tie-break; rewards added after selection.
    # Scores/tokens accumulated in full-width vectors -> one row store each
    # (instead of 2*BEAM single-lane masked stores).
    work = avg_logp
    scores_vec = jnp.zeros((1, V), jnp.float32)
    tokens_vec = jnp.zeros((1, V), jnp.float32)
    for beam in range(BEAM):                                       # static, tiny
        mx = jnp.max(work, axis=1, keepdims=True)                  # (1, 1)
        idx = jnp.min(jnp.where(work == mx, vocab_iota, V), axis=1, keepdims=True)
        hit = vocab_iota == idx
        reward = jnp.sum(jnp.where(hit, wr, 0.0), axis=1, keepdims=True)
        sel = vocab_iota == beam
        scores_vec = jnp.where(sel, mx + reward, scores_vec)
        tokens_vec = jnp.where(sel, idx.astype(jnp.float32), tokens_vec)
        work = jnp.where(hit, -jnp.inf, work)
    out_ref[OROW_SCORE:OROW_SCORE + 1, 0:V] = scores_vec
    out_ref[OROW_TOKEN:OROW_TOKEN + 1, 0:V] = tokens_vec


# ------------------------------ host-side packing ----------------------------
def pack_model_params(p):
    """Pre-transpose / pre-split / pre-sum a model's params into one (PR,128) slab."""
    w_ih0_t = p["w_ih0"].T                               # (E+H, 4H)
    w_att_t = p["w_att"].T                               # (2H, H)
    slab = jnp.zeros((PR, 128), jnp.float32)
    slab = slab.at[ROW_EMBED:ROW_EMBED + V, 0:E].set(p["embed"])
    slab = slab.at[ROW_W0E:ROW_W0E + E, 0:4 * H].set(w_ih0_t[:E])
    slab = slab.at[ROW_W0FH:ROW_W0FH + H, 0:4 * H].set(w_ih0_t[E:])
    slab = slab.at[ROW_W0FH + H:ROW_W0FH + 2 * H, 0:4 * H].set(p["w_hh0"].T)
    slab = slab.at[ROW_W1X:ROW_W1X + H, 0:4 * H].set(p["w_ih1"].T)
    slab = slab.at[ROW_W1H:ROW_W1H + H, 0:4 * H].set(p["w_hh1"].T)
    slab = slab.at[ROW_WC:ROW_WC + H, 0:H].set(w_att_t[:H])
    slab = slab.at[ROW_WH:ROW_WH + H, 0:H].set(w_att_t[H:])
    slab = slab.at[ROW_WO:ROW_WO + H, 0:V].set(p["w_out"].T)
    slab = slab.at[ROW_BIAS + 0, 0:4 * H].set((p["b_ih0"] + p["b_hh0"]).reshape(-1))
    slab = slab.at[ROW_BIAS + 1, 0:4 * H].set((p["b_ih1"] + p["b_hh1"]).reshape(-1))
    slab = slab.at[ROW_BIAS + 2, 0:H].set(p["b_att"].reshape(-1))
    slab = slab.at[ROW_BIAS + 3, 0:V].set(p["b_out"].reshape(-1))
    return slab


def pack_all_params(all_params):
    return jnp.stack([pack_model_params(p) for p in all_params])    # (M, PR, 128)


def _pack_dynamic(encoder_outputs, states):
    slabs = []
    for m in range(M):
        enc = encoder_outputs[m]
        prev_h, prev_c, prev_feed = states[m]
        s = jnp.zeros((DR, 128), jnp.float32)
        s = s.at[DROW_FH, 0:H].set(prev_feed[0])
        s = s.at[DROW_FH, H:2 * H].set(prev_h[0])
        s = s.at[DROW_H1, 0:H].set(prev_h[1])
        s = s.at[DROW_C0, 0:H].set(prev_c[0])
        s = s.at[DROW_C1, 0:H].set(prev_c[1])
        s = s.at[DROW_ENC:DROW_ENC + S, 0:H].set(enc)
        s = s.at[DROW_ENCT:DROW_ENCT + H, 0:S].set(enc.T)            # host-side transpose
        slabs.append(s)
    return jnp.stack(slabs)                                          # (M, DR, 128)


# ------------------------- ensemble forward wrapper --------------------------
@jax.jit
def decoder_step_ensemble(input_token, timestep, packed_params, encoder_outputs, states):
    del timestep  # unused by the decoder step (interface parity with module)
    # TODO(synk): vocab_reduction_module / possible_translation_tokens path not
    # modeled (vocab reduction disabled), matching the `None` branch.
    dyn = _pack_dynamic(encoder_outputs, states)

    packed_out = pl.pallas_call(
        _decoder_step_ensemble_kernel,
        out_shape=jax.ShapeDtypeStruct((OR, 128), jnp.float32),
        in_specs=[
            pl.BlockSpec(memory_space=pltpu.MemorySpace.SMEM),   # input token (scalar)
            pl.BlockSpec(memory_space=pltpu.MemorySpace.VMEM),   # packed params slab
            pl.BlockSpec(memory_space=pltpu.MemorySpace.VMEM),   # packed per-step slab
        ],
        out_specs=pl.BlockSpec(memory_space=pltpu.MemorySpace.VMEM),
    )(input_token, packed_params, dyn)

    best_tokens = packed_out[OROW_TOKEN, 0:BEAM].astype(jnp.int32).reshape(1, BEAM)
    best_scores = packed_out[OROW_SCORE, 0:BEAM].reshape(1, BEAM)
    avg_attn = packed_out[OROW_ATTN, 0:S].reshape(1, S)

    outputs = [best_tokens, best_scores, avg_attn]
    for m in range(M):
        base = OROW_STATE + 2 * m
        row = packed_out[base]
        outputs.append(row[0:H].reshape(1, H))             # h0
        outputs.append(row[H:2 * H].reshape(1, H))         # c0
        outputs.append(row[2 * H:3 * H].reshape(1, H))     # h1
        outputs.append(row[3 * H:4 * H].reshape(1, H))     # c1
        outputs.append(packed_out[base + 1, 0:H].reshape(1, H))   # input_feed
    return tuple(outputs)


# ------------------------------ pure-JAX reference ---------------------------
def _reference(input_token, encoder_outputs, states, all_params, word_rewards):
    logps, attns, state_outs = [], [], []
    for i in range(M):
        p = all_params[i]
        prev_h, prev_c, prev_feed = states[i]
        emb = p["embed"][input_token[0, 0]].reshape(1, E)
        x = jnp.concatenate([emb, prev_feed], axis=1)

        def cell(x, h, c, wih, bih, whh, bhh):
            g = x @ wih.T + bih + h @ whh.T + bhh
            i_ = jax.nn.sigmoid(g[:, :H]); f = jax.nn.sigmoid(g[:, H:2 * H])
            gg = jnp.tanh(g[:, 2 * H:3 * H]); o = jax.nn.sigmoid(g[:, 3 * H:])
            c2 = f * c + i_ * gg
            return o * jnp.tanh(c2), c2

        h0, c0 = cell(x, prev_h[0:1], prev_c[0:1],
                      p["w_ih0"], p["b_ih0"], p["w_hh0"], p["b_hh0"])
        h1, c1 = cell(h0, prev_h[1:2], prev_c[1:2],
                      p["w_ih1"], p["b_ih1"], p["w_hh1"], p["b_hh1"])
        enc = encoder_outputs[i]
        attn = jax.nn.softmax(h1 @ enc.T, axis=1)
        ctx = attn @ enc
        comb = jnp.tanh(jnp.concatenate([ctx, h1], axis=1) @ p["w_att"].T + p["b_att"])
        logits = comb @ p["w_out"].T + p["b_out"]
        logps.append(jax.nn.log_softmax(logits, axis=1))
        attns.append(attn)
        state_outs.extend([h0, c0, h1, c1, comb])
    avg_lp = jnp.mean(jnp.concatenate(logps, 0), 0, keepdims=True)
    avg_at = jnp.mean(jnp.concatenate(attns, 0), 0, keepdims=True)
    sc, tok = jax.lax.top_k(avg_lp.reshape(1, -1), BEAM)
    sc = sc + word_rewards[0][tok]
    return tok, sc, avg_at, state_outs


# ----------------------------------- main ------------------------------------
def _init_params(key):
    ks = jax.random.split(key, 12)
    sc = 0.1
    return {
        "embed": sc * jax.random.normal(ks[0], (V, E), jnp.float32),
        "w_ih0": sc * jax.random.normal(ks[1], (4 * H, E + H), jnp.float32),
        "b_ih0": sc * jax.random.normal(ks[2], (1, 4 * H), jnp.float32),
        "w_hh0": sc * jax.random.normal(ks[3], (4 * H, H), jnp.float32),
        "b_hh0": sc * jax.random.normal(ks[4], (1, 4 * H), jnp.float32),
        "w_ih1": sc * jax.random.normal(ks[5], (4 * H, H), jnp.float32),
        "b_ih1": sc * jax.random.normal(ks[6], (1, 4 * H), jnp.float32),
        "w_hh1": sc * jax.random.normal(ks[7], (4 * H, H), jnp.float32),
        "b_hh1": sc * jax.random.normal(ks[8], (1, 4 * H), jnp.float32),
        "w_att": sc * jax.random.normal(ks[9], (H, 2 * H), jnp.float32),
        "b_att": sc * jax.random.normal(ks[10], (1, H), jnp.float32),
        "w_out": sc * jax.random.normal(ks[11], (V, H), jnp.float32),
        "b_out": jnp.zeros((1, V), jnp.float32),
    }


if __name__ == "__main__":
    root = jax.random.PRNGKey(0)
    k_models, k_data = jax.random.split(root)

    all_params = [_init_params(k) for k in jax.random.split(k_models, M)]
    packed_params = pack_all_params(all_params)          # one-time packing (like __init__)

    dk = jax.random.split(k_data, 4 * M)
    encoder_outputs = [jax.random.normal(dk[4 * i + 0], (S, H), jnp.float32)
                       for i in range(M)]
    states = [(0.1 * jax.random.normal(dk[4 * i + 1], (L, H), jnp.float32),
               0.1 * jax.random.normal(dk[4 * i + 2], (L, H), jnp.float32),
               0.1 * jax.random.normal(dk[4 * i + 3], (1, H), jnp.float32))
              for i in range(M)]

    input_token = jnp.array([[EOS]], dtype=jnp.int32)    # (1, 1)
    timestep = jnp.array([[0]], dtype=jnp.int32)         # (1, 1)

    outputs = decoder_step_ensemble(input_token, timestep, packed_params,
                                    encoder_outputs, states)
    outputs = jax.block_until_ready(outputs)
    best_tokens, best_scores, avg_attn = outputs[0], outputs[1], outputs[2]
    state_outputs = outputs[3:]

    # correctness check against pure-JAX reference
    word_rewards = jnp.full((1, V), WORD_REWARD, jnp.float32)
    word_rewards = word_rewards.at[0, EOS].set(0.0)
    word_rewards = word_rewards.at[0, UNK].set(WORD_REWARD + UNK_REWARD)
    ref_tok, ref_sc, ref_attn, ref_states = _reference(
        input_token, encoder_outputs, states, all_params, word_rewards)

    np.testing.assert_array_equal(np.asarray(best_tokens), np.asarray(ref_tok))
    np.testing.assert_allclose(np.asarray(best_scores), np.asarray(ref_sc),
                               rtol=2e-3, atol=2e-3)
    np.testing.assert_allclose(np.asarray(avg_attn), np.asarray(ref_attn),
                               rtol=2e-3, atol=2e-3)
    for got, want in zip(state_outputs, ref_states):
        np.testing.assert_allclose(np.asarray(got), np.asarray(want),
                                   rtol=2e-3, atol=2e-3)

    print("KERNEL_OK")
</pallas_src>

<mosaic_0001>
module attributes {stable_mosaic.version = 11 : i64} {
  func.func @_decoder_step_ensemble_kernel(%arg0: memref<1x1xi32, #tpu.memory_space<smem>>, %arg1: memref<2x280x128xf32, #tpu.memory_space<vmem>>, %arg2: memref<2x48x128xf32, #tpu.memory_space<vmem>>, %arg3: memref<12x128xf32, #tpu.memory_space<vmem>>) attributes {dimension_semantics = [], scalar_prefetch = 0 : i64, scratch_operands = 0 : i64, tpu.core_type = #tpu.core_type<tc>} {
    %cst = arith.constant 0.000000e+00 : f32
    %0 = vector.broadcast %cst : f32 to vector<12x128xf32>
    %c0 = arith.constant 0 : index
    %c0_0 = arith.constant 0 : index
    %1 = vector.load %arg3[%c0, %c0_0] : memref<12x128xf32, #tpu.memory_space<vmem>>, vector<12x128xf32>
    tpu.vector_store %arg3[%c0, %c0_0], %0 {strides = array<i32>} : memref<12x128xf32, #tpu.memory_space<vmem>>, vector<12x128xf32>,
    %c0_1 = arith.constant 0 : index
    %c0_2 = arith.constant 0 : index
    %2 = memref.load %arg0[%c0_1, %c0_2] : memref<1x1xi32, #tpu.memory_space<smem>>
    %3 = tpu.iota {dimensions = array<i32: 1>} : vector<1x32xi32>
    %4 = vector.broadcast %2 : i32 to vector<1x32xi32>
    %5 = arith.cmpi eq, %3, %4 : vector<1x32xi32>
    %6 = arith.extui %5 : vector<1x32xi1> to vector<1x32xi32>
    %7 = arith.sitofp %6 : vector<1x32xi32> to vector<1x32xf32>
    %cst_3 = arith.constant 0.000000e+00 : f32
    %8 = vector.broadcast %cst_3 : f32 to vector<1x32xf32>
    %cst_4 = arith.constant 0.000000e+00 : f32
    %9 = vector.broadcast %cst_4 : f32 to vector<1x8xf32>
    %c0_5 = arith.constant 0 : index
    %c0_6 = arith.constant 0 : index
    %c0_7 = arith.constant 0 : index
    %10 = vector.load %arg1[%c0_5, %c0_6, %c0_7] : memref<2x280x128xf32, #tpu.memory_space<vmem>>, vector<1x32x16xf32>
    %11 = vector.shape_cast %10 : vector<1x32x16xf32> to vector<32x16xf32>
    %cst_8 = arith.constant dense<0.000000e+00> : vector<1x16xf32>
    %12 = tpu.matmul %7, %11, %cst_8 {dimension_numbers = #tpu.dot_dimension_numbers<[1], [0], [0], [1], [0, 0, 1, 1], [], []>} : vector<1x32xf32>, vector<32x16xf32>, vector<1x16xf32> -> vector<1x16xf32>
    %c0_9 = arith.constant 0 : index
    %c0_10 = arith.constant 0 : index
    %c0_11 = arith.constant 0 : index
    %13 = vector.load %arg2[%c0_9, %c0_10, %c0_11] : memref<2x48x128xf32, #tpu.memory_space<vmem>>, vector<1x1x64xf32>
    %14 = vector.shape_cast %13 : vector<1x1x64xf32> to vector<1x64xf32>
    %c0_12 = arith.constant 0 : index
    %c32 = arith.constant 32 : index
    %c0_13 = arith.constant 0 : index
    %15 = vector.load %arg1[%c0_12, %c32, %c0_13] : memref<2x280x128xf32, #tpu.memory_space<vmem>>, vector<1x16x128xf32>
    %16 = vector.shape_cast %15 : vector<1x16x128xf32> to vector<16x128xf32>
    %cst_14 = arith.constant dense<0.000000e+00> : vector<1x128xf32>
    %17 = tpu.matmul %12, %16, %cst_14 {dimension_numbers = #tpu.dot_dimension_numbers<[1], [0], [0], [1], [0, 0, 1, 1], [], []>} : vector<1x16xf32>, vector<16x128xf32>, vector<1x128xf32> -> vector<1x128xf32>
    %c0_15 = arith.constant 0 : index
    %c48 = arith.constant 48 : index
    %c0_16 = arith.constant 0 : index
    %18 = vector.load %arg1[%c0_15, %c48, %c0_16] : memref<2x280x128xf32, #tpu.memory_space<vmem>>, vector<1x64x128xf32>
    %19 = vector.shape_cast %18 : vector<1x64x128xf32> to vector<64x128xf32>
    %cst_17 = arith.constant dense<0.000000e+00> : vector<1x128xf32>
    %20 = tpu.matmul %14, %19, %cst_17 {dimension_numbers = #tpu.dot_dimension_numbers<[1], [0], [0], [1], [0, 0, 1, 1], [], []>} : vector<1x64xf32>, vector<64x128xf32>, vector<1x128xf32> -> vector<1x128xf32>
    %21 = arith.addf %17, %20 : vector<1x128xf32>
    %c0_18 = arith.constant 0 : index
    %c272 = arith.constant 272 : index
    %c0_19 = arith.constant 0 : index
    %22 = vector.load %arg1[%c0_18, %c272, %c0_19] : memref<2x280x128xf32, #tpu.memory_space<vmem>>, vector<1x1x128xf32>
    %23 = vector.shape_cast %22 : vector<1x1x128xf32> to vector<1x128xf32>
    %24 = arith.addf %21, %23 : vector<1x128xf32>
    %c0_20 = arith.constant 0 : index
    %c2 = arith.constant 2 : index
    %c0_21 = arith.constant 0 : index
    %25 = vector.load %arg2[%c0_20, %c2, %c0_21] : memref<2x48x128xf32, #tpu.memory_space<vmem>>, vector<1x1x32xf32>
    %26 = vector.shape_cast %25 : vector<1x1x32xf32> to vector<1x32xf32>
    %27 = arith.negf %24 : vector<1x128xf32>
    %28 = math.exp %27 : vector<1x128xf32>
    %cst_22 = arith.constant 1.000000e+00 : f32
    %29 = vector.broadcast %cst_22 : f32 to vector<1x128xf32>
    %30 = arith.addf %29, %28 : vector<1x128xf32>
    %31 = arith.divf %29, %30 : vector<1x128xf32>
    %32 = math.tanh %24 : vector<1x128xf32>
    %33 = vector.extract_strided_slice %31 {offsets = [0, 32], sizes = [1, 32], strides = [1, 1]} : vector<1x128xf32> to vector<1x32xf32>
    %34 = arith.mulf %33, %26 : vector<1x32xf32>
    %35 = vector.extract_strided_slice %31 {offsets = [0, 0], sizes = [1, 32], strides = [1, 1]} : vector<1x128xf32> to vector<1x32xf32>
    %36 = vector.extract_strided_slice %32 {offsets = [0, 64], sizes = [1, 32], strides = [1, 1]} : vector<1x128xf32> to vector<1x32xf32>
    %37 = arith.mulf %35, %36 : vector<1x32xf32>
    %38 = arith.addf %34, %37 : vector<1x32xf32>
    %39 = vector.extract_strided_slice %31 {offsets = [0, 96], sizes = [1, 32], strides = [1, 1]} : vector<1x128xf32> to vector<1x32xf32>
    %40 = math.tanh %38 : vector<1x32xf32>
    %41 = arith.mulf %39, %40 : vector<1x32xf32>
    %c0_23 = arith.constant 0 : index
    %c1 = arith.constant 1 : index
    %c0_24 = arith.constant 0 : index
    %42 = vector.load %arg2[%c0_23, %c1, %c0_24] : memref<2x48x128xf32, #tpu.memory_space<vmem>>, vector<1x1x32xf32>
    %43 = vector.shape_cast %42 : vector<1x1x32xf32> to vector<1x32xf32>
    %c0_25 = arith.constant 0 : index
    %c112 = arith.constant 112 : index
    %c0_26 = arith.constant 0 : index
    %44 = vector.load %arg1[%c0_25, %c112, %c0_26] : memref<2x280x128xf32, #tpu.memory_space<vmem>>, vector<1x32x128xf32>
    %45 = vector.shape_cast %44 : vector<1x32x128xf32> to vector<32x128xf32>
    %cst_27 = arith.constant dense<0.000000e+00> : vector<1x128xf32>
    %46 = tpu.matmul %41, %45, %cst_27 {dimension_numbers = #tpu.dot_dimension_numbers<[1], [0], [0], [1], [0, 0, 1, 1], [], []>} : vector<1x32xf32>, vector<32x128xf32>, vector<1x128xf32> -> vector<1x128xf32>
    %c0_28 = arith.constant 0 : index
    %c144 = arith.constant 144 : index
    %c0_29 = arith.constant 0 : index
    %47 = vector.load %arg1[%c0_28, %c144, %c0_29] : memref<2x280x128xf32, #tpu.memory_space<vmem>>, vector<1x32x128xf32>
    %48 = vector.shape_cast %47 : vector<1x32x128xf32> to vector<32x128xf32>
    %cst_30 = arith.constant dense<0.000000e+00> : vector<1x128xf32>
    %49 = tpu.matmul %43, %48, %cst_30 {dimension_numbers = #tpu.dot_dimension_numbers<[1], [0], [0], [1], [0, 0, 1, 1], [], []>} : vector<1x32xf32>, vector<32x128xf32>, vector<1x128xf32> -> vector<1x128xf32>
    %50 = arith.addf %46, %49 : vector<1x128xf32>
    %c0_31 = arith.constant 0 : index
    %c273 = arith.constant 273 : index
    %c0_32 = arith.constant 0 : index
    %51 = vector.load %arg1[%c0_31, %c273, %c0_32] : memref<2x280x128xf32, #tpu.memory_space<vmem>>, vector<1x1x128xf32>
    %52 = vector.shape_cast %51 : vector<1x1x128xf32> to vector<1x128xf32>
    %53 = arith.addf %50, %52 : vector<1x128xf32>
    %c0_33 = arith.constant 0 : index
    %c3 = arith.constant 3 : index
    %c0_34 = arith.constant 0 : index
    %54 = vector.load %arg2[%c0_33, %c3, %c0_34] : memref<2x48x128xf32, #tpu.memory_space<vmem>>, vector<1x1x32xf32>
    %55 = vector.shape_cast %54 : vector<1x1x32xf32> to vector<1x32xf32>
    %56 = arith.negf %53 : vector<1x128xf32>
    %57 = math.exp %56 : vector<1x128xf32>
    %cst_35 = arith.constant 1.000000e+00 : f32
    %58 = vector.broadcast %cst_35 : f32 to vector<1x128xf32>
    %59 = arith.addf %58, %57 : vector<1x128xf32>
    %60 = arith.divf %58, %59 : vector<1x128xf32>
    %61 = math.tanh %53 : vector<1x128xf32>
    %62 = vector.extract_strided_slice %60 {offsets = [0, 32], sizes = [1, 32], strides = [1, 1]} : vector<1x128xf32> to vector<1x32xf32>
    %63 = arith.mulf %62, %55 : vector<1x32xf32>
    %64 = vector.extract_strided_slice %60 {offsets = [0, 0], sizes = [1, 32], strides = [1, 1]} : vector<1x128xf32> to vector<1x32xf32>
    %65 = vector.extract_strided_slice %61 {offsets = [0, 64], sizes = [1, 32], strides = [1, 1]} : vector<1x128xf32> to vector<1x32xf32>
    %66 = arith.mulf %64, %65 : vector<1x32xf32>
    %67 = arith.addf %63, %66 : vector<1x32xf32>
    %68 = vector.extract_strided_slice %60 {offsets = [0, 96], sizes = [1, 32], strides = [1, 1]} : vector<1x128xf32> to vector<1x32xf32>
    %69 = math.tanh %67 : vector<1x32xf32>
    %70 = arith.mulf %68, %69 : vector<1x32xf32>
    %c0_36 = arith.constant 0 : index
    %c8 = arith.constant 8 : index
    %c0_37 = arith.constant 0 : index
    %71 = vector.load %arg2[%c0_36, %c8, %c0_37] : memref<2x48x128xf32, #tpu.memory_space<vmem>>, vector<1x8x32xf32>
    %72 = vector.shape_cast %71 : vector<1x8x32xf32> to vector<8x32xf32>
    %c0_38 = arith.constant 0 : index
    %c16 = arith.constant 16 : index
    %c0_39 = arith.constant 0 : index
    %73 = vector.load %arg2[%c0_38, %c16, %c0_39] : memref<2x48x128xf32, #tpu.memory_space<vmem>>, vector<1x32x8xf32>
    %74 = vector.shape_cast %73 : vector<1x32x8xf32> to vector<32x8xf32>
    %cst_40 = arith.constant dense<0.000000e+00> : vector<1x8xf32>
    %75 = tpu.matmul %70, %74, %cst_40 {dimension_numbers = #tpu.dot_dimension_numbers<[1], [0], [0], [1], [0, 0, 1, 1], [], []>} : vector<1x32xf32>, vector<32x8xf32>, vector<1x8xf32> -> vector<1x8xf32>
    %cst_41 = arith.constant dense<0xFF800000> : vector<1xf32>
    %76 = vector.multi_reduction <maximumf>, %75, %cst_41 [1] : vector<1x8xf32> to vector<1xf32>
    %77 = vector.shape_cast %76 : vector<1xf32> to vector<1x1xf32>
    %78 = vector.broadcast %77 : vector<1x1xf32> to vector<1x8xf32>
    %79 = arith.subf %75, %78 : vector<1x8xf32>
    %80 = math.exp %79 : vector<1x8xf32>
    %cst_42 = arith.constant dense<0.000000e+00> : vector<1xf32>
    %81 = vector.multi_reduction <add>, %80, %cst_42 [1] : vector<1x8xf32> to vector<1xf32>
    %82 = vector.shape_cast %81 : vector<1xf32> to vector<1x1xf32>
    %83 = tpu.reciprocal %82 {approx = true} : vector<1x1xf32> -> vector<1x1xf32>
    %84 = vector.broadcast %83 : vector<1x1xf32> to vector<1x8xf32>
    %85 = arith.mulf %80, %84 : vector<1x8xf32>
    %cst_43 = arith.constant dense<0.000000e+00> : vector<1x32xf32>
    %86 = tpu.matmul %85, %72, %cst_43 {dimension_numbers = #tpu.dot_dimension_numbers<[1], [0], [0], [1], [0, 0, 1, 1], [], []>} : vector<1x8xf32>, vector<8x32xf32>, vector<1x32xf32> -> vector<1x32xf32>
    %c0_44 = arith.constant 0 : index
    %c176 = arith.constant 176 : index
    %c0_45 = arith.constant 0 : index
    %87 = vector.load %arg1[%c0_44, %c176, %c0_45] : memref<2x280x128xf32, #tpu.memory_space<vmem>>, vector<1x32x32xf32>
    %88 = vector.shape_cast %87 : vector<1x32x32xf32> to vector<32x32xf32>
    %cst_46 = arith.constant dense<0.000000e+00> : vector<1x32xf32>
    %89 = tpu.matmul %86, %88, %cst_46 {dimension_numbers = #tpu.dot_dimension_numbers<[1], [0], [0], [1], [0, 0, 1, 1], [], []>} : vector<1x32xf32>, vector<32x32xf32>, vector<1x32xf32> -> vector<1x32xf32>
    %c0_47 = arith.constant 0 : index
    %c208 = arith.constant 208 : index
    %c0_48 = arith.constant 0 : index
    %90 = vector.load %arg1[%c0_47, %c208, %c0_48] : memref<2x280x128xf32, #tpu.memory_space<vmem>>, vector<1x32x32xf32>
    %91 = vector.shape_cast %90 : vector<1x32x32xf32> to vector<32x32xf32>
    %cst_49 = arith.constant dense<0.000000e+00> : vector<1x32xf32>
    %92 = tpu.matmul %70, %91, %cst_49 {dimension_numbers = #tpu.dot_dimension_numbers<[1], [0], [0], [1], [0, 0, 1, 1], [], []>} : vector<1x32xf32>, vector<32x32xf32>, vector<1x32xf32> -> vector<1x32xf32>
    %93 = arith.addf %89, %92 : vector<1x32xf32>
    %c0_50 = arith.constant 0 : index
    %c274 = arith.constant 274 : index
    %c0_51 = arith.constant 0 : index
    %94 = vector.load %arg1[%c0_50, %c274, %c0_51] : memref<2x280x128xf32, #tpu.memory_space<vmem>>, vector<1x1x32xf32>
    %95 = vector.shape_cast %94 : vector<1x1x32xf32> to vector<1x32xf32>
    %96 = arith.addf %93, %95 : vector<1x32xf32>
    %97 = math.tanh %96 : vector<1x32xf32>
    %c0_52 = arith.constant 0 : index
    %c240 = arith.constant 240 : index
    %c0_53 = arith.constant 0 : index
    %98 = vector.load %arg1[%c0_52, %c240, %c0_53] : memref<2x280x128xf32, #tpu.memory_space<vmem>>, vector<1x32x32xf32>
    %99 = vector.shape_cast %98 : vector<1x32x32xf32> to vector<32x32xf32>
    %cst_54 = arith.constant dense<0.000000e+00> : vector<1x32xf32>
    %100 = tpu.matmul %97, %99, %cst_54 {dimension_numbers = #tpu.dot_dimension_numbers<[1], [0], [0], [1], [0, 0, 1, 1], [], []>} : vector<1x32xf32>, vector<32x32xf32>, vector<1x32xf32> -> vector<1x32xf32>
    %c0_55 = arith.constant 0 : index
    %c275 = arith.constant 275 : index
    %c0_56 = arith.constant 0 : index
    %101 = vector.load %arg1[%c0_55, %c275, %c0_56] : memref<2x280x128xf32, #tpu.memory_space<vmem>>, vector<1x1x32xf32>
    %102 = vector.shape_cast %101 : vector<1x1x32xf32> to vector<1x32xf32>
    %103 = arith.addf %100, %102 : vector<1x32xf32>
    %cst_57 = arith.constant dense<0xFF800000> : vector<1xf32>
    %104 = vector.multi_reduction <maximumf>, %103, %cst_57 [1] : vector<1x32xf32> to vector<1xf32>
    %105 = vector.shape_cast %104 : vector<1xf32> to vector<1x1xf32>
    %106 = vector.broadcast %105 : vector<1x1xf32> to vector<1x32xf32>
    %107 = arith.subf %103, %106 : vector<1x32xf32>
    %108 = math.exp %107 : vector<1x32xf32>
    %cst_58 = arith.constant dense<0.000000e+00> : vector<1xf32>
    %109 = vector.multi_reduction <add>, %108, %cst_58 [1] : vector<1x32xf32> to vector<1xf32>
    %110 = vector.shape_cast %109 : vector<1xf32> to vector<1x1xf32>
    %111 = math.log %110 : vector<1x1xf32>
    %112 = vector.broadcast %111 : vector<1x1xf32> to vector<1x32xf32>
    %113 = arith.subf %107, %112 : vector<1x32xf32>
    %114 = arith.addf %8, %113 : vector<1x32xf32>
    %115 = arith.addf %9, %85 : vector<1x8xf32>
    %c8_59 = arith.constant 8 : index
    %c0_60 = arith.constant 0 : index
    %116 = vector.load %arg3[%c8_59, %c0_60] : memref<12x128xf32, #tpu.memory_space<vmem>>, vector<1x32xf32>
    tpu.vector_store %arg3[%c8_59, %c0_60], %41 {strides = array<i32>} : memref<12x128xf32, #tpu.memory_space<vmem>>, vector<1x32xf32>,
    %c8_61 = arith.constant 8 : index
    %c32_62 = arith.constant 32 : index
    %117 = vector.load %arg3[%c8_61, %c32_62] : memref<12x128xf32, #tpu.memory_space<vmem>>, vector<1x32xf32>
    tpu.vector_store %arg3[%c8_61, %c32_62], %38 {strides = array<i32>} : memref<12x128xf32, #tpu.memory_space<vmem>>, vector<1x32xf32>,
    %c8_63 = arith.constant 8 : index
    %c64 = arith.constant 64 : index
    %118 = vector.load %arg3[%c8_63, %c64] : memref<12x128xf32, #tpu.memory_space<vmem>>, vector<1x32xf32>
    tpu.vector_store %arg3[%c8_63, %c64], %70 {strides = array<i32>} : memref<12x128xf32, #tpu.memory_space<vmem>>, vector<1x32xf32>,
    %c8_64 = arith.constant 8 : index
    %c96 = arith.constant 96 : index
    %119 = vector.load %arg3[%c8_64, %c96] : memref<12x128xf32, #tpu.memory_space<vmem>>, vector<1x32xf32>
    tpu.vector_store %arg3[%c8_64, %c96], %67 {strides = array<i32>} : memref<12x128xf32, #tpu.memory_space<vmem>>, vector<1x32xf32>,
    %c9 = arith.constant 9 : index
    %c0_65 = arith.constant 0 : index
    %120 = vector.load %arg3[%c9, %c0_65] : memref<12x128xf32, #tpu.memory_space<vmem>>, vector<1x32xf32>
    tpu.vector_store %arg3[%c9, %c0_65], %97 {strides = array<i32>} : memref<12x128xf32, #tpu.memory_space<vmem>>, vector<1x32xf32>,
    %c1_66 = arith.constant 1 : index
    %c0_67 = arith.constant 0 : index
    %c0_68 = arith.constant 0 : index
    %121 = vector.load %arg1[%c1_66, %c0_67, %c0_68] : memref<2x280x128xf32, #tpu.memory_space<vmem>>, vector<1x32x16xf32>
    %122 = vector.shape_cast %121 : vector<1x32x16xf32> to vector<32x16xf32>
    %cst_69 = arith.constant dense<0.000000e+00> : vector<1x16xf32>
    %123 = tpu.matmul %7, %122, %cst_69 {dimension_numbers = #tpu.dot_dimension_numbers<[1], [0], [0], [1], [0, 0, 1, 1], [], []>} : vector<1x32xf32>, vector<32x16xf32>, vector<1x16xf32> -> vector<1x16xf32>
    %c1_70 = arith.constant 1 : index
    %c0_71 = arith.constant 0 : index
    %c0_72 = arith.constant 0 : index
    %124 = vector.load %arg2[%c1_70, %c0_71, %c0_72] : memref<2x48x128xf32, #tpu.memory_space<vmem>>, vector<1x1x64xf32>
    %125 = vector.shape_cast %124 : vector<1x1x64xf32> to vector<1x64xf32>
    %c1_73 = arith.constant 1 : index
    %c32_74 = arith.constant 32 : index
    %c0_75 = arith.constant 0 : index
    %126 = vector.load %arg1[%c1_73, %c32_74, %c0_75] : memref<2x280x128xf32, #tpu.memory_space<vmem>>, vector<1x16x128xf32>
    %127 = vector.shape_cast %126 : vector<1x16x128xf32> to vector<16x128xf32>
    %cst_76 = arith.constant dense<0.000000e+00> : vector<1x128xf32>
    %128 = tpu.matmul %123, %127, %cst_76 {dimension_numbers = #tpu.dot_dimension_numbers<[1], [0], [0], [1], [0, 0, 1, 1], [], []>} : vector<1x16xf32>, vector<16x128xf32>, vector<1x128xf32> -> vector<1x128xf32>
    %c1_77 = arith.constant 1 : index
    %c48_78 = arith.constant 48 : index
    %c0_79 = arith.constant 0 : index
    %129 = vector.load %arg1[%c1_77, %c48_78, %c0_79] : memref<2x280x128xf32, #tpu.memory_space<vmem>>, vector<1x64x128xf32>
    %130 = vector.shape_cast %129 : vector<1x64x128xf32> to vector<64x128xf32>
    %cst_80 = arith.constant dense<0.000000e+00> : vector<1x128xf32>
    %131 = tpu.matmul %125, %130, %cst_80 {dimension_numbers = #tpu.dot_dimension_numbers<[1], [0], [0], [1], [0, 0, 1, 1], [], []>} : vector<1x64xf32>, vector<64x128xf32>, vector<1x128xf32> -> vector<1x128xf32>
    %132 = arith.addf %128, %131 : vector<1x128xf32>
    %c1_81 = arith.constant 1 : index
    %c272_82 = arith.constant 272 : index
    %c0_83 = arith.constant 0 : index
    %133 = vector.load %arg1[%c1_81, %c272_82, %c0_83] : memref<2x280x128xf32, #tpu.memory_space<vmem>>, vector<1x1x128xf32>
    %134 = vector.shape_cast %133 : vector<1x1x128xf32> to vector<1x128xf32>
    %135 = arith.addf %132, %134 : vector<1x128xf32>
    %c1_84 = arith.constant 1 : index
    %c2_85 = arith.constant 2 : index
    %c0_86 = arith.constant 0 : index
    %136 = vector.load %arg2[%c1_84, %c2_85, %c0_86] : memref<2x48x128xf32, #tpu.memory_space<vmem>>, vector<1x1x32xf32>
    %137 = vector.shape_cast %136 : vector<1x1x32xf32> to vector<1x32xf32>
    %138 = arith.negf %135 : vector<1x128xf32>
    %139 = math.exp %138 : vector<1x128xf32>
    %cst_87 = arith.constant 1.000000e+00 : f32
    %140 = vector.broadcast %cst_87 : f32 to vector<1x128xf32>
    %141 = arith.addf %140, %139 : vector<1x128xf32>
    %142 = arith.divf %140, %141 : vector<1x128xf32>
    %143 = math.tanh %135 : vector<1x128xf32>
    %144 = vector.extract_strided_slice %142 {offsets = [0, 32], sizes = [1, 32], strides = [1, 1]} : vector<1x128xf32> to vector<1x32xf32>
    %145 = arith.mulf %144, %137 : vector<1x32xf32>
    %146 = vector.extract_strided_slice %142 {offsets = [0, 0], sizes = [1, 32], strides = [1, 1]} : vector<1x128xf32> to vector<1x32xf32>
    %147 = vector.extract_strided_slice %143 {offsets = [0, 64], sizes = [1, 32], strides = [1, 1]} : vector<1x128xf32> to vector<1x32xf32>
    %148 = arith.mulf %146, %147 : vector<1x32xf32>
    %149 = arith.addf %145, %148 : vector<1x32xf32>
    %150 = vector.extract_strided_slice %142 {offsets = [0, 96], sizes = [1, 32], strides = [1, 1]} : vector<1x128xf32> to vector<1x32xf32>
    %151 = math.tanh %149 : vector<1x32xf32>
    %152 = arith.mulf %150, %151 : vector<1x32xf32>
    %c1_88 = arith.constant 1 : index
    %c1_89 = arith.constant 1 : index
    %c0_90 = arith.constant 0 : index
    %153 = vector.load %arg2[%c1_88, %c1_89, %c0_90] : memref<2x48x128xf32, #tpu.memory_space<vmem>>, vector<1x1x32xf32>
    %154 = vector.shape_cast %153 : vector<1x1x32xf32> to vector<1x32xf32>
    %c1_91 = arith.constant 1 : index
    %c112_92 = arith.constant 112 : index
    %c0_93 = arith.constant 0 : index
    %155 = vector.load %arg1[%c1_91, %c112_92, %c0_93] : memref<2x280x128xf32, #tpu.memory_space<vmem>>, vector<1x32x128xf32>
    %156 = vector.shape_cast %155 : vector<1x32x128xf32> to vector<32x128xf32>
    %cst_94 = arith.constant dense<0.000000e+00> : vector<1x128xf32>
    %157 = tpu.matmul %152, %156, %cst_94 {dimension_numbers = #tpu.dot_dimension_numbers<[1], [0], [0], [1], [0, 0, 1, 1], [], []>} : vector<1x32xf32>, vector<32x128xf32>, vector<1x128xf32> -> vector<1x128xf32>
    %c1_95 = arith.constant 1 : index
    %c144_96 = arith.constant 144 : index
    %c0_97 = arith.constant 0 : index
    %158 = vector.load %arg1[%c1_95, %c144_96, %c0_97] : memref<2x280x128xf32, #tpu.memory_space<vmem>>, vector<1x32x128xf32>
    %159 = vector.shape_cast %158 : vector<1x32x128xf32> to vector<32x128xf32>
    %cst_98 = arith.constant dense<0.000000e+00> : vector<1x128xf32>
    %160 = tpu.matmul %154, %159, %cst_98 {dimension_numbers = #tpu.dot_dimension_numbers<[1], [0], [0], [1], [0, 0, 1, 1], [], []>} : vector<1x32xf32>, vector<32x128xf32>, vector<1x128xf32> -> vector<1x128xf32>
    %161 = arith.addf %157, %160 : vector<1x128xf32>
    %c1_99 = arith.constant 1 : index
    %c273_100 = arith.constant 273 : index
    %c0_101 = arith.constant 0 : index
    %162 = vector.load %arg1[%c1_99, %c273_100, %c0_101] : memref<2x280x128xf32, #tpu.memory_space<vmem>>, vector<1x1x128xf32>
    %163 = vector.shape_cast %162 : vector<1x1x128xf32> to vector<1x128xf32>
    %164 = arith.addf %161, %163 : vector<1x128xf32>
    %c1_102 = arith.constant 1 : index
    %c3_103 = arith.constant 3 : index
    %c0_104 = arith.constant 0 : index
    %165 = vector.load %arg2[%c1_102, %c3_103, %c0_104] : memref<2x48x128xf32, #tpu.memory_space<vmem>>, vector<1x1x32xf32>
    %166 = vector.shape_cast %165 : vector<1x1x32xf32> to vector<1x32xf32>
    %167 = arith.negf %164 : vector<1x128xf32>
    %168 = math.exp %167 : vector<1x128xf32>
    %cst_105 = arith.constant 1.000000e+00 : f32
    %169 = vector.broadcast %cst_105 : f32 to vector<1x128xf32>
    %170 = arith.addf %169, %168 : vector<1x128xf32>
    %171 = arith.divf %169, %170 : vector<1x128xf32>
    %172 = math.tanh %164 : vector<1x128xf32>
    %173 = vector.extract_strided_slice %171 {offsets = [0, 32], sizes = [1, 32], strides = [1, 1]} : vector<1x128xf32> to vector<1x32xf32>
    %174 = arith.mulf %173, %166 : vector<1x32xf32>
    %175 = vector.extract_strided_slice %171 {offsets = [0, 0], sizes = [1, 32], strides = [1, 1]} : vector<1x128xf32> to vector<1x32xf32>
    %176 = vector.extract_strided_slice %172 {offsets = [0, 64], sizes = [1, 32], strides = [1, 1]} : vector<1x128xf32> to vector<1x32xf32>
    %177 = arith.mulf %175, %176 : vector<1x32xf32>
    %178 = arith.addf %174, %177 : vector<1x32xf32>
    %179 = vector.extract_strided_slice %171 {offsets = [0, 96], sizes = [1, 32], strides = [1, 1]} : vector<1x128xf32> to vector<1x32xf32>
    %180 = math.tanh %178 : vector<1x32xf32>
    %181 = arith.mulf %179, %180 : vector<1x32xf32>
    %c1_106 = arith.constant 1 : index
    %c8_107 = arith.constant 8 : index
    %c0_108 = arith.constant 0 : index
    %182 = vector.load %arg2[%c1_106, %c8_107, %c0_108] : memref<2x48x128xf32, #tpu.memory_space<vmem>>, vector<1x8x32xf32>
    %183 = vector.shape_cast %182 : vector<1x8x32xf32> to vector<8x32xf32>
    %c1_109 = arith.constant 1 : index
    %c16_110 = arith.constant 16 : index
    %c0_111 = arith.constant 0 : index
    %184 = vector.load %arg2[%c1_109, %c16_110, %c0_111] : memref<2x48x128xf32, #tpu.memory_space<vmem>>, vector<1x32x8xf32>
    %185 = vector.shape_cast %184 : vector<1x32x8xf32> to vector<32x8xf32>
    %cst_112 = arith.constant dense<0.000000e+00> : vector<1x8xf32>
    %186 = tpu.matmul %181, %185, %cst_112 {dimension_numbers = #tpu.dot_dimension_numbers<[1], [0], [0], [1], [0, 0, 1, 1], [], []>} : vector<1x32xf32>, vector<32x8xf32>, vector<1x8xf32> -> vector<1x8xf32>
    %cst_113 = arith.constant dense<0xFF800000> : vector<1xf32>
    %187 = vector.multi_reduction <maximumf>, %186, %cst_113 [1] : vector<1x8xf32> to vector<1xf32>
    %188 = vector.shape_cast %187 : vector<1xf32> to vector<1x1xf32>
    %189 = vector.broadcast %188 : vector<1x1xf32> to vector<1x8xf32>
    %190 = arith.subf %186, %189 : vector<1x8xf32>
    %191 = math.exp %190 : vector<1x8xf32>
    %cst_114 = arith.constant dense<0.000000e+00> : vector<1xf32>
    %192 = vector.multi_reduction <add>, %191, %cst_114 [1] : vector<1x8xf32> to vector<1xf32>
    %193 = vector.shape_cast %192 : vector<1xf32> to vector<1x1xf32>
    %194 = tpu.reciprocal %193 {approx = true} : vector<1x1xf32> -> vector<1x1xf32>
    %195 = vector.broadcast %194 : vector<1x1xf32> to vector<1x8xf32>
    %196 = arith.mulf %191, %195 : vector<1x8xf32>
    %cst_115 = arith.constant dense<0.000000e+00> : vector<1x32xf32>
    %197 = tpu.matmul %196, %183, %cst_115 {dimension_numbers = #tpu.dot_dimension_numbers<[1], [0], [0], [1], [0, 0, 1, 1], [], []>} : vector<1x8xf32>, vector<8x32xf32>, vector<1x32xf32> -> vector<1x32xf32>
    %c1_116 = arith.constant 1 : index
    %c176_117 = arith.constant 176 : index
    %c0_118 = arith.constant 0 : index
    %198 = vector.load %arg1[%c1_116, %c176_117, %c0_118] : memref<2x280x128xf32, #tpu.memory_space<vmem>>, vector<1x32x32xf32>
    %199 = vector.shape_cast %198 : vector<1x32x32xf32> to vector<32x32xf32>
    %cst_119 = arith.constant dense<0.000000e+00> : vector<1x32xf32>
    %200 = tpu.matmul %197, %199, %cst_119 {dimension_numbers = #tpu.dot_dimension_numbers<[1], [0], [0], [1], [0, 0, 1, 1], [], []>} : vector<1x32xf32>, vector<32x32xf32>, vector<1x32xf32> -> vector<1x32xf32>
    %c1_120 = arith.constant 1 : index
    %c208_121 = arith.constant 208 : index
    %c0_122 = arith.constant 0 : index
    %201 = vector.load %arg1[%c1_120, %c208_121, %c0_122] : memref<2x280x128xf32, #tpu.memory_space<vmem>>, vector<1x32x32xf32>
    %202 = vector.shape_cast %201 : vector<1x32x32xf32> to vector<32x32xf32>
    %cst_123 = arith.constant dense<0.000000e+00> : vector<1x32xf32>
    %203 = tpu.matmul %181, %202, %cst_123 {dimension_numbers = #tpu.dot_dimension_numbers<[1], [0], [0], [1], [0, 0, 1, 1], [], []>} : vector<1x32xf32>, vector<32x32xf32>, vector<1x32xf32> -> vector<1x32xf32>
    %204 = arith.addf %200, %203 : vector<1x32xf32>
    %c1_124 = arith.constant 1 : index
    %c274_125 = arith.constant 274 : index
    %c0_126 = arith.constant 0 : index
    %205 = vector.load %arg1[%c1_124, %c274_125, %c0_126] : memref<2x280x128xf32, #tpu.memory_space<vmem>>, vector<1x1x32xf32>
    %206 = vector.shape_cast %205 : vector<1x1x32xf32> to vector<1x32xf32>
    %207 = arith.addf %204, %206 : vector<1x32xf32>
    %208 = math.tanh %207 : vector<1x32xf32>
    %c1_127 = arith.constant 1 : index
    %c240_128 = arith.constant 240 : index
    %c0_129 = arith.constant 0 : index
    %209 = vector.load %arg1[%c1_127, %c240_128, %c0_129] : memref<2x280x128xf32, #tpu.memory_space<vmem>>, vector<1x32x32xf32>
    %210 = vector.shape_cast %209 : vector<1x32x32xf32> to vector<32x32xf32>
    %cst_130 = arith.constant dense<0.000000e+00> : vector<1x32xf32>
    %211 = tpu.matmul %208, %210, %cst_130 {dimension_numbers = #tpu.dot_dimension_numbers<[1], [0], [0], [1], [0, 0, 1, 1], [], []>} : vector<1x32xf32>, vector<32x32xf32>, vector<1x32xf32> -> vector<1x32xf32>
    %c1_131 = arith.constant 1 : index
    %c275_132 = arith.constant 275 : index
    %c0_133 = arith.constant 0 : index
    %212 = vector.load %arg1[%c1_131, %c275_132, %c0_133] : memref<2x280x128xf32, #tpu.memory_space<vmem>>, vector<1x1x32xf32>
    %213 = vector.shape_cast %212 : vector<1x1x32xf32> to vector<1x32xf32>
    %214 = arith.addf %211, %213 : vector<1x32xf32>
    %cst_134 = arith.constant dense<0xFF800000> : vector<1xf32>
    %215 = vector.multi_reduction <maximumf>, %214, %cst_134 [1] : vector<1x32xf32> to vector<1xf32>
    %216 = vector.shape_cast %215 : vector<1xf32> to vector<1x1xf32>
    %217 = vector.broadcast %216 : vector<1x1xf32> to vector<1x32xf32>
    %218 = arith.subf %214, %217 : vector<1x32xf32>
    %219 = math.exp %218 : vector<1x32xf32>
    %cst_135 = arith.constant dense<0.000000e+00> : vector<1xf32>
    %220 = vector.multi_reduction <add>, %219, %cst_135 [1] : vector<1x32xf32> to vector<1xf32>
    %221 = vector.shape_cast %220 : vector<1xf32> to vector<1x1xf32>
    %222 = math.log %221 : vector<1x1xf32>
    %223 = vector.broadcast %222 : vector<1x1xf32> to vector<1x32xf32>
    %224 = arith.subf %218, %223 : vector<1x32xf32>
    %225 = arith.addf %114, %224 : vector<1x32xf32>
    %226 = arith.addf %115, %196 : vector<1x8xf32>
    %c10 = arith.constant 10 : index
    %c0_136 = arith.constant 0 : index
    %227 = vector.load %arg3[%c10, %c0_136] : memref<12x128xf32, #tpu.memory_space<vmem>>, vector<1x32xf32>
    tpu.vector_store %arg3[%c10, %c0_136], %152 {strides = array<i32>} : memref<12x128xf32, #tpu.memory_space<vmem>>, vector<1x32xf32>,
    %c10_137 = arith.constant 10 : index
    %c32_138 = arith.constant 32 : index
    %228 = vector.load %arg3[%c10_137, %c32_138] : memref<12x128xf32, #tpu.memory_space<vmem>>, vector<1x32xf32>
    tpu.vector_store %arg3[%c10_137, %c32_138], %149 {strides = array<i32>} : memref<12x128xf32, #tpu.memory_space<vmem>>, vector<1x32xf32>,
    %c10_139 = arith.constant 10 : index
    %c64_140 = arith.constant 64 : index
    %229 = vector.load %arg3[%c10_139, %c64_140] : memref<12x128xf32, #tpu.memory_space<vmem>>, vector<1x32xf32>
    tpu.vector_store %arg3[%c10_139, %c64_140], %181 {strides = array<i32>} : memref<12x128xf32, #tpu.memory_space<vmem>>, vector<1x32xf32>,
    %c10_141 = arith.constant 10 : index
    %c96_142 = arith.constant 96 : index
    %230 = vector.load %arg3[%c10_141, %c96_142] : memref<12x128xf32, #tpu.memory_space<vmem>>, vector<1x32xf32>
    tpu.vector_store %arg3[%c10_141, %c96_142], %178 {strides = array<i32>} : memref<12x128xf32, #tpu.memory_space<vmem>>, vector<1x32xf32>,
    %c11 = arith.constant 11 : index
    %c0_143 = arith.constant 0 : index
    %231 = vector.load %arg3[%c11, %c0_143] : memref<12x128xf32, #tpu.memory_space<vmem>>, vector<1x32xf32>
    tpu.vector_store %arg3[%c11, %c0_143], %208 {strides = array<i32>} : memref<12x128xf32, #tpu.memory_space<vmem>>, vector<1x32xf32>,
    %cst_144 = arith.constant 5.000000e-01 : f32
    %232 = vector.broadcast %cst_144 : f32 to vector<1x32xf32>
    %233 = arith.mulf %225, %232 : vector<1x32xf32>
    %cst_145 = arith.constant 5.000000e-01 : f32
    %234 = vector.broadcast %cst_145 : f32 to vector<1x8xf32>
    %235 = arith.mulf %226, %234 : vector<1x8xf32>
    %c0_146 = arith.constant 0 : index
    %c0_147 = arith.constant 0 : index
    %236 = vector.load %arg3[%c0_146, %c0_147] : memref<12x128xf32, #tpu.memory_space<vmem>>, vector<1x8xf32>
    tpu.vector_store %arg3[%c0_146, %c0_147], %235 {strides = array<i32>} : memref<12x128xf32, #tpu.memory_space<vmem>>, vector<1x8xf32>,
    %cst_148 = arith.constant 5.000000e-01 : f32
    %237 = vector.broadcast %cst_148 : f32 to vector<1x32xf32>
    %c2_i32 = arith.constant 2 : i32
    %238 = vector.broadcast %c2_i32 : i32 to vector<1x32xi32>
    %239 = arith.cmpi eq, %3, %238 : vector<1x32xi32>
    %cst_149 = arith.constant 0.000000e+00 : f32
    %240 = vector.broadcast %cst_149 : f32 to vector<1x32xf32>
    %241 = arith.select %239, %240, %237 : vector<1x32xi1>, vector<1x32xf32>
    %c3_i32 = arith.constant 3 : i32
    %242 = vector.broadcast %c3_i32 : i32 to vector<1x32xi32>
    %243 = arith.cmpi eq, %3, %242 : vector<1x32xi32>
    %cst_150 = arith.constant 2.500000e-01 : f32
    %244 = vector.broadcast %cst_150 : f32 to vector<1x32xf32>
    %245 = arith.select %243, %244, %241 : vector<1x32xi1>, vector<1x32xf32>
    %cst_151 = arith.constant 0.000000e+00 : f32
    %246 = vector.broadcast %cst_151 : f32 to vector<1x32xf32>
    %cst_152 = arith.constant 0.000000e+00 : f32
    %247 = vector.broadcast %cst_152 : f32 to vector<1x32xf32>
    %cst_153 = arith.constant dense<0xFF800000> : vector<1xf32>
    %248 = vector.multi_reduction <maximumf>, %233, %cst_153 [1] : vector<1x32xf32> to vector<1xf32>
    %249 = vector.shape_cast %248 : vector<1xf32> to vector<1x1xf32>
    %250 = vector.broadcast %249 : vector<1x1xf32> to vector<1x32xf32>
    %251 = arith.cmpf oeq, %233, %250 : vector<1x32xf32>
    %c32_i32 = arith.constant 32 : i32
    %252 = vector.broadcast %c32_i32 : i32 to vector<1x32xi32>
    %253 = arith.select %251, %3, %252 : vector<1x32xi1>, vector<1x32xi32>
    %cst_154 = arith.constant dense<2147483647> : vector<1xi32>
    %254 = vector.multi_reduction <minsi>, %253, %cst_154 [1] : vector<1x32xi32> to vector<1xi32>
    %255 = vector.shape_cast %254 : vector<1xi32> to vector<1x1xi32>
    %256 = vector.broadcast %255 : vector<1x1xi32> to vector<1x32xi32>
    %257 = arith.cmpi eq, %3, %256 : vector<1x32xi32>
    %cst_155 = arith.constant 0.000000e+00 : f32
    %258 = vector.broadcast %cst_155 : f32 to vector<1x32xf32>
    %259 = arith.select %257, %245, %258 : vector<1x32xi1>, vector<1x32xf32>
    %cst_156 = arith.constant dense<0.000000e+00> : vector<1xf32>
    %260 = vector.multi_reduction <add>, %259, %cst_156 [1] : vector<1x32xf32> to vector<1xf32>
    %261 = vector.shape_cast %260 : vector<1xf32> to vector<1x1xf32>
    %c0_i32 = arith.constant 0 : i32
    %262 = vector.broadcast %c0_i32 : i32 to vector<1x32xi32>
    %263 = arith.cmpi eq, %3, %262 : vector<1x32xi32>
    %264 = arith.addf %249, %261 : vector<1x1xf32>
    %265 = vector.shape_cast %264 : vector<1x1xf32> to vector<1x1xf32>
    %266 = vector.broadcast %265 : vector<1x1xf32> to vector<1x32xf32>
    %267 = arith.select %263, %266, %246 : vector<1x32xi1>, vector<1x32xf32>
    %268 = arith.sitofp %255 : vector<1x1xi32> to vector<1x1xf32>
    %269 = vector.shape_cast %268 : vector<1x1xf32> to vector<1x1xf32>
    %270 = vector.broadcast %269 : vector<1x1xf32> to vector<1x32xf32>
    %271 = arith.select %263, %270, %247 : vector<1x32xi1>, vector<1x32xf32>
    %cst_157 = arith.constant 0xFF800000 : f32
    %272 = vector.broadcast %cst_157 : f32 to vector<1x32xf32>
    %273 = arith.select %257, %272, %233 : vector<1x32xi1>, vector<1x32xf32>
    %cst_158 = arith.constant dense<0xFF800000> : vector<1xf32>
    %274 = vector.multi_reduction <maximumf>, %273, %cst_158 [1] : vector<1x32xf32> to vector<1xf32>
    %275 = vector.shape_cast %274 : vector<1xf32> to vector<1x1xf32>
    %276 = vector.broadcast %275 : vector<1x1xf32> to vector<1x32xf32>
    %277 = arith.cmpf oeq, %273, %276 : vector<1x32xf32>
    %c32_i32_159 = arith.constant 32 : i32
    %278 = vector.broadcast %c32_i32_159 : i32 to vector<1x32xi32>
    %279 = arith.select %277, %3, %278 : vector<1x32xi1>, vector<1x32xi32>
    %cst_160 = arith.constant dense<2147483647> : vector<1xi32>
    %280 = vector.multi_reduction <minsi>, %279, %cst_160 [1] : vector<1x32xi32> to vector<1xi32>
    %281 = vector.shape_cast %280 : vector<1xi32> to vector<1x1xi32>
    %282 = vector.broadcast %281 : vector<1x1xi32> to vector<1x32xi32>
    %283 = arith.cmpi eq, %3, %282 : vector<1x32xi32>
    %cst_161 = arith.constant 0.000000e+00 : f32
    %284 = vector.broadcast %cst_161 : f32 to vector<1x32xf32>
    %285 = arith.select %283, %245, %284 : vector<1x32xi1>, vector<1x32xf32>
    %cst_162 = arith.constant dense<0.000000e+00> : vector<1xf32>
    %286 = vector.multi_reduction <add>, %285, %cst_162 [1] : vector<1x32xf32> to vector<1xf32>
    %287 = vector.shape_cast %286 : vector<1xf32> to vector<1x1xf32>
    %c1_i32 = arith.constant 1 : i32
    %288 = vector.broadcast %c1_i32 : i32 to vector<1x32xi32>
    %289 = arith.cmpi eq, %3, %288 : vector<1x32xi32>
    %290 = arith.addf %275, %287 : vector<1x1xf32>
    %291 = vector.shape_cast %290 : vector<1x1xf32> to vector<1x1xf32>
    %292 = vector.broadcast %291 : vector<1x1xf32> to vector<1x32xf32>
    %293 = arith.select %289, %292, %267 : vector<1x32xi1>, vector<1x32xf32>
    %294 = arith.sitofp %281 : vector<1x1xi32> to vector<1x1xf32>
    %295 = vector.shape_cast %294 : vector<1x1xf32> to vector<1x1xf32>
    %296 = vector.broadcast %295 : vector<1x1xf32> to vector<1x32xf32>
    %297 = arith.select %289, %296, %271 : vector<1x32xi1>, vector<1x32xf32>
    %cst_163 = arith.constant 0xFF800000 : f32
    %298 = vector.broadcast %cst_163 : f32 to vector<1x32xf32>
    %299 = arith.select %283, %298, %273 : vector<1x32xi1>, vector<1x32xf32>
    %cst_164 = arith.constant dense<0xFF800000> : vector<1xf32>
    %300 = vector.multi_reduction <maximumf>, %299, %cst_164 [1] : vector<1x32xf32> to vector<1xf32>
    %301 = vector.shape_cast %300 : vector<1xf32> to vector<1x1xf32>
    %302 = vector.broadcast %301 : vector<1x1xf32> to vector<1x32xf32>
    %303 = arith.cmpf oeq, %299, %302 : vector<1x32xf32>
    %c32_i32_165 = arith.constant 32 : i32
    %304 = vector.broadcast %c32_i32_165 : i32 to vector<1x32xi32>
    %305 = arith.select %303, %3, %304 : vector<1x32xi1>, vector<1x32xi32>
    %cst_166 = arith.constant dense<2147483647> : vector<1xi32>
    %306 = vector.multi_reduction <minsi>, %305, %cst_166 [1] : vector<1x32xi32> to vector<1xi32>
    %307 = vector.shape_cast %306 : vector<1xi32> to vector<1x1xi32>
    %308 = vector.broadcast %307 : vector<1x1xi32> to vector<1x32xi32>
    %309 = arith.cmpi eq, %3, %308 : vector<1x32xi32>
    %cst_167 = arith.constant 0.000000e+00 : f32
    %310 = vector.broadcast %cst_167 : f32 to vector<1x32xf32>
    %311 = arith.select %309, %245, %310 : vector<1x32xi1>, vector<1x32xf32>
    %cst_168 = arith.constant dense<0.000000e+00> : vector<1xf32>
    %312 = vector.multi_reduction <add>, %311, %cst_168 [1] : vector<1x32xf32> to vector<1xf32>
    %313 = vector.shape_cast %312 : vector<1xf32> to vector<1x1xf32>
    %c2_i32_169 = arith.constant 2 : i32
    %314 = vector.broadcast %c2_i32_169 : i32 to vector<1x32xi32>
    %315 = arith.cmpi eq, %3, %314 : vector<1x32xi32>
    %316 = arith.addf %301, %313 : vector<1x1xf32>
    %317 = vector.shape_cast %316 : vector<1x1xf32> to vector<1x1xf32>
    %318 = vector.broadcast %317 : vector<1x1xf32> to vector<1x32xf32>
    %319 = arith.select %315, %318, %293 : vector<1x32xi1>, vector<1x32xf32>
    %320 = arith.sitofp %307 : vector<1x1xi32> to vector<1x1xf32>
    %321 = vector.shape_cast %320 : vector<1x1xf32> to vector<1x1xf32>
    %322 = vector.broadcast %321 : vector<1x1xf32> to vector<1x32xf32>
    %323 = arith.select %315, %322, %297 : vector<1x32xi1>, vector<1x32xf32>
    %cst_170 = arith.constant 0xFF800000 : f32
    %324 = vector.broadcast %cst_170 : f32 to vector<1x32xf32>
    %325 = arith.select %309, %324, %299 : vector<1x32xi1>, vector<1x32xf32>
    %cst_171 = arith.constant dense<0xFF800000> : vector<1xf32>
    %326 = vector.multi_reduction <maximumf>, %325, %cst_171 [1] : vector<1x32xf32> to vector<1xf32>
    %327 = vector.shape_cast %326 : vector<1xf32> to vector<1x1xf32>
    %328 = vector.broadcast %327 : vector<1x1xf32> to vector<1x32xf32>
    %329 = arith.cmpf oeq, %325, %328 : vector<1x32xf32>
    %c32_i32_172 = arith.constant 32 : i32
    %330 = vector.broadcast %c32_i32_172 : i32 to vector<1x32xi32>
    %331 = arith.select %329, %3, %330 : vector<1x32xi1>, vector<1x32xi32>
    %cst_173 = arith.constant dense<2147483647> : vector<1xi32>
    %332 = vector.multi_reduction <minsi>, %331, %cst_173 [1] : vector<1x32xi32> to vector<1xi32>
    %333 = vector.shape_cast %332 : vector<1xi32> to vector<1x1xi32>
    %334 = vector.broadcast %333 : vector<1x1xi32> to vector<1x32xi32>
    %335 = arith.cmpi eq, %3, %334 : vector<1x32xi32>
    %cst_174 = arith.constant 0.000000e+00 : f32
    %336 = vector.broadcast %cst_174 : f32 to vector<1x32xf32>
    %337 = arith.select %335, %245, %336 : vector<1x32xi1>, vector<1x32xf32>
    %cst_175 = arith.constant dense<0.000000e+00> : vector<1xf32>
    %338 = vector.multi_reduction <add>, %337, %cst_175 [1] : vector<1x32xf32> to vector<1xf32>
    %339 = vector.shape_cast %338 : vector<1xf32> to vector<1x1xf32>
    %c3_i32_176 = arith.constant 3 : i32
    %340 = vector.broadcast %c3_i32_176 : i32 to vector<1x32xi32>
    %341 = arith.cmpi eq, %3, %340 : vector<1x32xi32>
    %342 = arith.addf %327, %339 : vector<1x1xf32>
    %343 = vector.shape_cast %342 : vector<1x1xf32> to vector<1x1xf32>
    %344 = vector.broadcast %343 : vector<1x1xf32> to vector<1x32xf32>
    %345 = arith.select %341, %344, %319 : vector<1x32xi1>, vector<1x32xf32>
    %346 = arith.sitofp %333 : vector<1x1xi32> to vector<1x1xf32>
    %347 = vector.shape_cast %346 : vector<1x1xf32> to vector<1x1xf32>
    %348 = vector.broadcast %347 : vector<1x1xf32> to vector<1x32xf32>
    %349 = arith.select %341, %348, %323 : vector<1x32xi1>, vector<1x32xf32>
    %c1_177 = arith.constant 1 : index
    %c0_178 = arith.constant 0 : index
    %350 = vector.load %arg3[%c1_177, %c0_178] : memref<12x128xf32, #tpu.memory_space<vmem>>, vector<1x32xf32>
    tpu.vector_store %arg3[%c1_177, %c0_178], %345 {strides = array<i32>} : memref<12x128xf32, #tpu.memory_space<vmem>>, vector<1x32xf32>,
    %c2_179 = arith.constant 2 : index
    %c0_180 = arith.constant 0 : index
    %351 = vector.load %arg3[%c2_179, %c0_180] : memref<12x128xf32, #tpu.memory_space<vmem>>, vector<1x32xf32>
    tpu.vector_store %arg3[%c2_179, %c0_180], %349 {strides = array<i32>} : memref<12x128xf32, #tpu.memory_space<vmem>>, vector<1x32xf32>,
    return
  }
}

</mosaic_0001>

<bundles_post_ra>
// kernel: decoder_step_ensemble.1
= control target key start
LH: loop header
LB: loop body
LE: loop exit
PB: predicated region body
PF: predicated region fallthrough
CT: control target
= control target key end

     0   :  { %v18_v0 = vlaneseq  ;;  %v2477_v1 = vmov 0.0|0.0   ;;  %vm2478_vm0 = vmmov 0   ;;  %v2479_v5 = vmov 0.0   ;;  %s2480_s18 = smov 64   ;;  %s2481_s21 = smov 32   ;;  %s3099_s1 = inlined_call_operand.vmem [shape: f32[2,280,128], index: 1, kind: input, shape index: {}]   ;;  %s3100_s0 = inlined_call_operand.<no memory space> [shape: s32[1,1], index: 0, kind: input, shape index: {}]   ;;  %s3101_s2 = inlined_call_operand.vmem [shape: f32[2,48,128], index: 2, kind: input, shape index: {}]   ;;  %s3102_s3 = inlined_call_operand.vmem [shape: f32[12,128], index: 3, kind: output, shape index: {}]  }
   0x1   :  { %2304 = vmatprep.subr.bf16.mxu0 %v2477_v1  ;;  %v24_v2 = vld [vmem:[%s3099_s1] sm:$0xff]  ;;  %v25_v3 = vld [vmem:[%s3099_s1 + $0x8] sm:$0xff]  ;;  %v26_v4 = vld [vmem:[%s3099_s1 + $0x10] sm:$0xff]  ;;  %2096 = vmatprep.mubr.msk.f32.mxu0 %vm2478_vm0, %v2479_v5  ;;  %v20_v9 = vstv %s3100_s0  ;;  %vm28_vm2 = vcmask 261120   ;;  %vm113_vm3 = vcmask 523264   ;;  %vm187_vm4 = vcmask 130048  }
   0x2   :  { %v2305_v6 = vpack.c.bf16 %v25_v3, %v24_v2  ;;  %v27_v7 = vld [vmem:[%s3099_s1 + $0x18] sm:$0xff]  ;;  %v2519_v8 = vand.u32 127, %v18_v0  ;;  %2310 = vmatprep.subr.bf16.mxu1 %v2477_v1  ;;  %v105_v10 = vld [vmem:[%s3099_s1 + $0x30] sm:$0xff]  ;;  %2115 = vmatprep.mubr.msk.f32.mxu1 %vm2478_vm0, %v2479_v5  ;;  %v107_v13 = vld [vmem:[%s3099_s1 + $0x40] sm:$0xff]  ;;  %16 = vst [vmem:[%s3102_s3 + $0x8] sm:$0xf] %v2479_v5 }
   0x3   :  { %v106_v11 = vld [vmem:[%s3099_s1 + $0x38] sm:$0xff]  ;;  %v108_v14 = vld [vmem:[%s3099_s1 + $0x48] sm:$0xff]  ;;  %v2308_v15 = vpack.c.bf16 %v27_v7, %v26_v4  ;;  %v109_v17 = vld [vmem:[%s3099_s1 + $0x50] sm:$0xff]  ;;  %15 = vst [vmem:[%s3102_s3] sm:$0xff] %v2479_v5  ;;  %vm878_vm5 = vcmask 253952   ;;  %vm895_vm6 = vcmask 516352   ;;  %vm560_vm7 = vcmask 57344  }
   0x4   :  { %v2311_v12 = vpack.c.bf16 %v106_v11, %v105_v10  ;;  %2306 = vmatpush3.bf16.msra.mxu0 %v2305_v6  ;;  %vm21_vm1 = vcmp.eq.s32.totalorder %v2519_v8, %v20_v9  ;;  %v2314_v16 = vpack.c.bf16 %v108_v14, %v107_v13  ;;  %v110_v18 = vld [vmem:[%s3099_s1 + $0x58] sm:$0xff]  ;;  %v111_v21 = vld [vmem:[%s3099_s1 + $0x60] sm:$0xff]  ;;  %v112_v22 = vld [vmem:[%s3099_s1 + $0x68] sm:$0xff]  ;;  %vm572_vm8 = vcmask 64512  }
   0x5   :  { %2307 = vmatprep.subr.bf16.mxu0 %v2477_v1  ;;  %v2549_v19 = vsel %vm21_vm1, 1.0, %v2479_v5  ;;  %v2317_v20 = vpack.c.bf16 %v110_v18, %v109_v17  ;;  %v2320_v23 = vpack.c.bf16 %v112_v22, %v111_v21  ;;  %v103_v24 = vld [vmem:[%s3099_s1 + $0x20] sm:$0xff]  ;;  %v104_v25 = vld [vmem:[%s3099_s1 + $0x28] sm:$0xff]  ;;  %v261_v33 = vld [vmem:[%s3099_s1 + $0x110] sm:$0x1]  ;;  %vm1816_vm14 = vcmp.eq.s32.totalorder %v2519_v8, 0 }
   0x6   :  { %2312 = vmatpush3.bf16.msra.mxu1 %v2311_v12  ;;  %v102_v26 = vld [vmem:[%s3101_s2] sm:$0x1]  ;;  %v2323_v27 = vpack.c.bf16 %v104_v25, %v103_v24  ;;  %v263_v38 = vld [vmem:[%s3101_s2 + $0x2] sm:$0x1]  ;;  %v297_v49 = vld [vmem:[%s3099_s1 + $0x90] sm:$0xff]  ;;  %vm1847_vm15 = vcmp.eq.s32.totalorder %v2519_v8, 1 }
   0x7   :  { %2313 = vmatprep.subr.bf16.mxu1 %v2477_v1  ;;  %v298_v50 = vld [vmem:[%s3099_s1 + $0x98] sm:$0xff]  ;;  %v293_v51 = vld [vmem:[%s3099_s1 + $0x70] sm:$0xff]  ;;  %v299_v54 = vld [vmem:[%s3099_s1 + $0xa0] sm:$0xff] }
   0x8   :  { %2309 = vmatpush3.bf16.msra.mxu0 %v2308_v15  ;;  %v2326_v52 = vpack.c.bf16 %v298_v50, %v297_v49  ;;  %v294_v53 = vld [vmem:[%s3099_s1 + $0x78] sm:$0xff]  ;;  %v300_v55 = vld [vmem:[%s3099_s1 + $0xa8] sm:$0xff]  ;;  %v295_v57 = vld [vmem:[%s3099_s1 + $0x80] sm:$0xff] }
   0x9   :  { %2325 = vmatprep.subr.bf16.mxu0 %v2477_v1  ;;  %v2332_v56 = vpack.c.bf16 %v294_v53, %v293_v51  ;;  %v296_v58 = vld [vmem:[%s3099_s1 + $0x88] sm:$0xff]  ;;  %v2329_v59 = vpack.c.bf16 %v300_v55, %v299_v54  ;;  %v292_v61 = vld [vmem:[%s3101_s2 + $0x1] sm:$0x1]  ;;  %v451_v2 = vld [vmem:[%s3101_s2 + $0x3] sm:$0x1] }
   0xa   :  { %2315 = vmatpush3.bf16.msra.mxu1 %v2314_v16  ;;  %v2335_v60 = vpack.c.bf16 %v296_v58, %v295_v57  ;;  %v449_v9 = vld [vmem:[%s3099_s1 + $0x111] sm:$0x1]  ;;  %v480_v51 = vld [vmem:[%s3101_s2 + $0x8] sm:$0xff]  ;;  %v647_v54 = vld [vmem:[%s3099_s1 + $0xb8] sm:$0xff] }
   0xb   :  { %2316 = vmatprep.subr.bf16.mxu1 %v2477_v1  ;;  %2097 = vmatmul.mubr.msk.f32.vlgmr.msra.gmra.mrb[0].mxu0 %vm28_vm2, %v2549_v19  ;;  %v481_v25 = vld [vmem:[%s3101_s2 + $0x10] sm:$0xff]  ;;  %v648_v58 = vld [vmem:[%s3099_s1 + $0xc0] sm:$0xff] }
   0xc   :  { %2133 = vmatprep.mubr.msk.f32.mxu0 %vm2478_vm0, %v2479_v5  ;;  %2327 = vmatpush3.bf16.msra.mxu0 %v2326_v52  ;;  %v646_v53 = vld [vmem:[%s3099_s1 + $0xb0] sm:$0xff] }
   0xd   :  { %2328 = vmatprep.subr.bf16.mxu0 %v2477_v1 }
   0xe   :  { %2318 = vmatpush3.bf16.msra.mxu1 %v2317_v20 }
   0xf   :  { %2319 = vmatprep.subr.bf16.mxu1 %v2477_v1 }
  0x10   :  { %2330 = vmatpush3.bf16.msra.mxu0 %v2329_v59  ;;  %v649_v59 = vld [vmem:[%s3099_s1 + $0xc8] sm:$0xff] }
  0x11   :  { %2337 = vmatprep.subr.bf16.mxu0 %v2477_v1 }
  0x12   :  { %2321 = vmatpush3.bf16.msra.mxu1 %v2320_v23 }
  0x13   :  { %2322 = vmatprep.subr.bf16.mxu1 %v2477_v1  ;;  %2134 = vmatmul.mubr.msk.f32.vlgmr.msra.gmra.mrb[2].mxu0 %vm28_vm2, %v292_v61  ;;  %v1931_v61 = vld [vmem:[%s3099_s1 + $0x118] sm:$0xff] }
  0x14   :  { %2155 = vmatprep.mubr.msk.f32.mxu0 %vm2478_vm0, %v2479_v5 }
  0x15   :  { %2116 = vmatmul.mubr.msk.f32.vlgmr.msra.gmra.mrb[0].mxu1 %vm113_vm3, %v102_v26  ;;  %v482_v26 = vld [vmem:[%s3101_s2 + $0x18] sm:$0xff] }
  0x16   :  { %2324 = vmatpush3.bf16.msra.mxu1 %v2323_v27  ;;  %2122 = vmatprep.mubr.msk.f32.mxu1 %vm2478_vm0, %v2479_v5  ;;  %v483_v27 = vld [vmem:[%s3101_s2 + $0x20] sm:$0xff] }
  0x17   :  { %2331 = vmatprep.subr.bf16.mxu1 %v2477_v1 }
  0xde   :  { %v98_v28 = vpop.f32.mrb[0].mxu0 }
  0xdf   :  { %v2098_v29 = vpop.f32.mrb[1].mxu0  ;;  %2123 = vmatmul.mubr.msk.f32.vlgmr.msra.gmra.mrb[2].mxu1 %vm187_vm4, %v98_v28  ;;  %v2338_v28 = vpack.c.bf16 %v482_v26, %v481_v25  ;;  %v1939_v26 = vld [vmem:[%s3099_s1 + $0x148] sm:$0xff] }
  0xe0   :  { %2144 = vmatprep.mubr.msk.f32.mxu1 %vm2478_vm0, %v2479_v5  ;;  %2333 = vmatpush3.bf16.msra.mxu1 %v2332_v56  ;;  %v484_v29 = vld [vmem:[%s3101_s2 + $0x28] sm:$0xff]  ;;  %v2350_v56 = vpack.c.bf16 %v647_v54, %v646_v53 }
  0xe1   :  { %2334 = vmatprep.subr.bf16.mxu1 %v2477_v1  ;;  %2339 = vmatpush3.bf16.msra.mxu0 %v2338_v28 }
  0xe2   :  { %2340 = vmatprep.subr.bf16.mxu0 %v2477_v1 }
  0xe4   :  { %2336 = vmatpush3.bf16.msra.mxu1 %v2335_v60  ;;  %v2353_v60 = vpack.c.bf16 %v649_v59, %v648_v58 }
  0xe5   :  { %2158 = vmatprep.subr.mxu1 %v2479_v5 }
  0xe6   :  { %v370_v3 = vpop.f32.mrb[2].mxu0 }
  0xe7   :  { %v2135_v4 = vpop.f32.mrb[3].mxu0 }
  0xe8   :  { %v183_v30 = vpop.f32.mrb[0].mxu1 }
  0xe9   :  { %v2117_v31 = vpop.f32.mrb[1].mxu1 }
 0x1b2   :  { %v257_v32 = vpop.f32.mrb[2].mxu1 }
 0x1b3   :  { %v258_v34 = vadd.f32 %v257_v32, %v183_v30  ;;  %v2124_v35 = vpop.f32.mrb[3].mxu1  ;;  %v2341_v30 = vpack.c.bf16 %v484_v29, %v483_v27  ;;  %v1940_v27 = vld [vmem:[%s3099_s1 + $0x150] sm:$0xff]  ;;  %v1941_v29 = vld [vmem:[%s3099_s1 + $0x158] sm:$0xff] }
 0x1b4   :  { %v651_v35 = vld [vmem:[%s3099_s1 + $0xd8] sm:$0xff]  ;;  %v2368_v28 = vpack.c.bf16 %v1940_v27, %v1939_v26 }
 0x1b5   :  { %v262_v36 = vadd.f32 %v261_v33, %v258_v34  ;;  %2342 = vmatpush3.bf16.msra.mxu0 %v2341_v30  ;;  %v650_v34 = vld [vmem:[%s3099_s1 + $0xd0] sm:$0xff]  ;;  %v1942_v30 = vld [vmem:[%s3099_s1 + $0x160] sm:$0xff] }
 0x1b6   :  { %2343 = vmatprep.subr.bf16.mxu0 %v2477_v1 }
 0x1b7   :  { %2425 = vtanh.f32 %v262_v36  ;;  %v1922_v39 = vmul.f32 -1.442695, %v262_v36  ;;  %v2344_v36 = vpack.c.bf16 %v651_v35, %v650_v34  ;;  %v1943_v34 = vld [vmem:[%s3099_s1 + $0x168] sm:$0xff]  ;;  %v1944_v35 = vld [vmem:[%s3099_s1 + $0x170] sm:$0xff] }
 0x1b9   :  { %2427 = vpow2.f32 %v1922_v39 }
 0x1c1   :  { %v2426_v37 = vpop.eup %2425 }
 0x1c2   :  { %277 = vrot.lane.b32.xlu0 %v2426_v37, %s2480_s18  ;;  %v652_v37 = vld [vmem:[%s3099_s1 + $0xe0] sm:$0xff] }
 0x1c3   :  { %v2428_v40 = vpop.eup %2427 }
 0x1c4   :  { %v267_v41 = vadd.f32 1.0, %v2428_v40 }
 0x1c6   :  { %272 = vrot.lane.b32.xlu0 %v263_v38, %s2481_s21  ;;  %2429 = vrcp.f32 %v267_v41  ;;  %v653_v38 = vld [vmem:[%s3099_s1 + $0xe8] sm:$0xff] }
 0x1c7   :  { %v2347_v40 = vpack.c.bf16 %v653_v38, %v652_v37  ;;  %v1945_v37 = vld [vmem:[%s3099_s1 + $0x178] sm:$0xff]  ;;  %v1946_v38 = vld [vmem:[%s3099_s1 + $0x180] sm:$0xff] }
 0x1d0   :  { %v2430_v42 = vpop.eup %2429 }
 0x234   :  { %v278_v43 = vpop.permute.xlu0 %277 }
 0x235   :  { %v280_v44 = vmul.f32 %v2430_v42, %v278_v43 }
 0x237   :  { %282 = vrot.lane.b32.xlu1 %v280_v44, %s2481_s21 }
 0x238   :  { %v273_v45 = vpop.permute.xlu0 %272 }
 0x239   :  { %v275_v46 = vmul.f32 %v2430_v42, %v273_v45 }
 0x2a9   :  { %v283_v47 = vpop.permute.xlu1 %282 }
 0x2aa   :  { %v285_v48 = vadd.f32 %v283_v47, %v275_v46 }
 0x2ac   :  { %2431 = vtanh.f32 %v285_v48 }
 0x2b6   :  { %v2432_v62 = vpop.eup %2431 }
 0x2b7   :  { %288 = vrot.lane.b32.xlu1 %v2432_v62, %s2480_s18  ;;  %v1932_v62 = vld [vmem:[%s3099_s1 + $0x120] sm:$0xff] }
 0x329   :  { %v289_v63 = vpop.permute.xlu1 %288 }
 0x32a   :  { %v291_v0 = vmul.f32 %v2430_v42, %v289_v63  ;;  %v2362_v63 = vpack.c.bf16 %v1932_v62, %v1931_v61  ;;  %v1957_v62 = vld [vmem:[%s3099_s1 + $0x1a8] sm:$0xff] }
 0x32c   :  { %375 = vrot.lane.b32.xlu0 %v291_v0, %s2481_s21  ;;  %v1933_v0 = vld [vmem:[%s3099_s1 + $0x128] sm:$0xff] }
 0x330   :  { %460 = vrot.lane.b32.xlu0 %v451_v2, %s2481_s21  ;;  %v1934_v2 = vld [vmem:[%s3099_s1 + $0x130] sm:$0xff] }
 0x39e   :  { %v376_v6 = vpop.permute.xlu0 %375 }
 0x39f   :  { %894 = vst.msk [vmem:[%s3102_s3 + $0x8] sm:$0x1] %vm878_vm5, %v376_v6  ;;  %2145 = vmatmul.mubr.msk.f32.vlgmr.msra.gmra.mrb[4].mxu1 %vm28_vm2, %v376_v6  ;;  %v2365_v6 = vpack.c.bf16 %v1934_v2, %v1933_v0  ;;  %v1959_v0 = vld [vmem:[%s3099_s1 + $0x1b8] sm:$0xff] }
 0x3a0   :  { %2160 = vmatprep.mubr.msk.f32.mxu1 %vm2478_vm0, %v2479_v5  ;;  %896 = vst.msk [vmem:[%s3102_s3 + $0x8] sm:$0x1] %vm895_vm6, %v285_v48  ;;  %2159 = vmatpush3.msra.mxu1 %v480_v51 }
 0x3a1   :  { %2349 = vmatprep.subr.bf16.mxu1 %v2477_v1 }
 0x3a2   :  { %v461_v21 = vpop.permute.xlu0 %460 }
 0x472   :  { %v445_v7 = vpop.f32.mrb[4].mxu1 }
 0x473   :  { %v446_v10 = vadd.f32 %v445_v7, %v370_v3  ;;  %v2146_v11 = vpop.f32.mrb[5].mxu1  ;;  %v800_v7 = vld [vmem:[%s3099_s1 + $0xf0] sm:$0xff] }
 0x474   :  { %v802_v11 = vld [vmem:[%s3099_s1 + $0x100] sm:$0xff] }
 0x475   :  { %v450_v12 = vadd.f32 %v449_v9, %v446_v10  ;;  %v801_v9 = vld [vmem:[%s3099_s1 + $0xf8] sm:$0xff] }
 0x476   :  { %v2356_v10 = vpack.c.bf16 %v801_v9, %v800_v7  ;;  %v1954_v7 = vld [vmem:[%s3099_s1 + $0x190] sm:$0xff] }
 0x477   :  { %2433 = vtanh.f32 %v450_v12  ;;  %v1925_v14 = vmul.f32 -1.442695, %v450_v12  ;;  %v1952_v9 = vld [vmem:[%s3101_s2 + $0x31] sm:$0x1] }
 0x479   :  { %2435 = vpow2.f32 %v1925_v14  ;;  %v1938_v14 = vld [vmem:[%s3099_s1 + $0x140] sm:$0xff] }
 0x481   :  { %v2434_v13 = vpop.eup %2433 }
 0x482   :  { %465 = vrot.lane.b32.xlu1 %v2434_v13, %s2480_s18  ;;  %v1937_v13 = vld [vmem:[%s3099_s1 + $0x138] sm:$0xff] }
 0x483   :  { %v2436_v15 = vpop.eup %2435 }
 0x484   :  { %v455_v16 = vadd.f32 1.0, %v2436_v15  ;;  %v2380_v15 = vpack.c.bf16 %v1938_v14, %v1937_v13 }
 0x486   :  { %2437 = vrcp.f32 %v455_v16  ;;  %v1950_v16 = vld [vmem:[%s3101_s2 + $0x32] sm:$0x1] }
 0x490   :  { %v2438_v17 = vpop.eup %2437 }
 0x491   :  { %v463_v22 = vmul.f32 %v2438_v17, %v461_v21 }
 0x4f4   :  { %v466_v18 = vpop.permute.xlu1 %465 }
 0x4f5   :  { %v468_v20 = vmul.f32 %v2438_v17, %v466_v18  ;;  %v797_v18 = vld [vmem:[%s3099_s1 + $0x112] sm:$0x1] }
 0x4f7   :  { %470 = vrot.lane.b32.xlu1 %v468_v20, %s2481_s21 }
 0x569   :  { %v471_v23 = vpop.permute.xlu1 %470 }
 0x56a   :  { %v2654_v24 = vadd.f32 %v471_v23, %v463_v22 }
 0x56c   :  { %2439 = vtanh.f32 %v2654_v24 }
 0x576   :  { %v2440_v31 = vpop.eup %2439 }
 0x577   :  { %476 = vrot.lane.b32.xlu0 %v2440_v31, %s2480_s18 }
 0x5e9   :  { %v477_v32 = vpop.permute.xlu0 %476 }
 0x5ea   :  { %v2672_v33 = vmul.f32 %v2438_v17, %v477_v32  ;;  %v2371_v32 = vpack.c.bf16 %v1942_v30, %v1941_v29 }
 0x5ec   :  { %486 = vrot.lane.b32.xlu1 %v2672_v33, %s2481_s21 }
 0x65e   :  { %v487_v39 = vpop.permute.xlu1 %486 }
 0x65f   :  { %2156 = vmatmul.mubr.msk.f32.vlgmr.msra.gmra.mrb[4].mxu0 %vm28_vm2, %v487_v39 }
 0x660   :  { %2345 = vmatpush3.bf16.msra.mxu0 %v2344_v36  ;;  %2171 = vmatprep.mubr.msk.f32.mxu0 %vm2478_vm0, %v2479_v5  ;;  %v2374_v36 = vpack.c.bf16 %v1944_v35, %v1943_v34 }
 0x661   :  { %2346 = vmatprep.subr.bf16.mxu0 %v2477_v1 }
 0x664   :  { %2348 = vmatpush3.bf16.msra.mxu0 %v2347_v40  ;;  %v1936_v40 = vld [vmem:[%s3101_s2 + $0x30] sm:$0x1] }
 0x665   :  { %2355 = vmatprep.subr.bf16.mxu0 %v2477_v1 }
 0x667   :  { %2172 = vmatmul.mubr.msk.f32.vlgmr.msra.gmra.mrb[6].mxu0 %vm28_vm2, %v487_v39  ;;  %v2377_v39 = vpack.c.bf16 %v1946_v38, %v1945_v37 }
 0x668   :  { %2193 = vmatprep.mubr.msk.f32.mxu0 %vm2478_vm0, %v2479_v5  ;;  %2357 = vmatpush3.bf16.msra.mxu0 %v2356_v10 }
 0x669   :  { %2358 = vmatprep.subr.bf16.mxu0 %v2477_v1 }
 0x732   :  { %v556_v41 = vpop.f32.mrb[4].mxu0 }
 0x733   :  { %v2157_v42 = vpop.f32.mrb[5].mxu0  ;;  %v561_v43 = vsel %vm560_vm7, %v556_v41, -inf }
 0x734   :  { %562 = vmax.xlane.f32.xlu0 %v561_v43 }
 0x73a   :  { %v2697_v44 = vpop.f32.mrb[6].mxu0 }
 0x73b   :  { %v2173_v45 = vpop.f32.mrb[7].mxu0 }
 0x7c1   :  { %v563_v46 = vpop.xlane.xlu0 %562 }
 0x7c2   :  { %v564_v47 = vsub.f32 %v556_v41, %v563_v46  ;;  %v1949_v46 = vld [vmem:[%s3099_s1 + $0x228] sm:$0x1] }
 0x7c4   :  { %v565_v48 = vmul.f32 1.442695, %v564_v47 }
 0x7c6   :  { %2441 = vpow2.f32 %v565_v48 }
 0x7d0   :  { %v2442_v49 = vpop.eup %2441 }
 0x7d1   :  { %v567_v50 = vsel %vm560_vm7, %v2442_v49, 0.0 }
 0x7d2   :  { %568 = vadd.xlane.f32.xlu1 %v567_v50 }
 0x7e3   :  { %1153 = vrot.lane.b32.xlu1 %v1950_v16, %s2481_s21  ;;  %v1964_v16 = vld [vmem:[%s3101_s2 + $0x33] sm:$0x1] }
 0x85f   :  { %v569_v52 = vpop.xlane.xlu1 %568 }
 0x860   :  { %2443 = vrcp.f32 %v569_v52 }
 0x863   :  { %v1154_v58 = vpop.permute.xlu1 %1153 }
 0x86a   :  { %v2444_v55 = vpop.eup %2443 }
 0x86b   :  { %v2710_v57 = vmul.f32 %v2444_v55, %v2442_v49 }
 0x86d   :  { %2161 = vmatmul.mubr.msk.f32.vlgmr.msra.gmra.mrb[6].mxu1 %vm572_vm8, %v2710_v57 }
 0x86e   :  { %2351 = vmatpush3.bf16.msra.mxu1 %v2350_v56  ;;  %2182 = vmatprep.mubr.msk.f32.mxu1 %vm2478_vm0, %v2479_v5 }
 0x86f   :  { %2352 = vmatprep.subr.bf16.mxu1 %v2477_v1 }
 0x872   :  { %2354 = vmatpush3.bf16.msra.mxu1 %v2353_v60 }
 0x873   :  { %2361 = vmatprep.subr.bf16.mxu1 %v2477_v1 }
 0x940   :  { %v642_v3 = vpop.f32.mrb[6].mxu1 }
 0x941   :  { %v2162_v4 = vpop.f32.mrb[7].mxu1  ;;  %2183 = vmatmul.mubr.msk.f32.vlgmr.msra.gmra.mrb[8].mxu1 %vm28_vm2, %v642_v3  ;;  %v1960_v3 = vld [vmem:[%s3099_s1 + $0x1c0] sm:$0xff] }
 0x942   :  { %2363 = vmatpush3.bf16.msra.mxu1 %v2362_v63  ;;  %2204 = vmatprep.mubr.msk.f32.mxu1 %vm2478_vm0, %v2479_v5  ;;  %v1958_v63 = vld [vmem:[%s3099_s1 + $0x1b0] sm:$0xff]  ;;  %v2386_v4 = vpack.c.bf16 %v1960_v3, %v1959_v0 }
 0x943   :  { %2364 = vmatprep.subr.bf16.mxu1 %v2477_v1  ;;  %v2383_v2 = vpack.c.bf16 %v1958_v63, %v1957_v62 }
 0x946   :  { %2366 = vmatpush3.bf16.msra.mxu1 %v2365_v6  ;;  %v1953_v6 = vld [vmem:[%s3099_s1 + $0x188] sm:$0xff] }
 0x947   :  { %2379 = vmatprep.subr.bf16.mxu1 %v2477_v1  ;;  %v2389_v10 = vpack.c.bf16 %v1954_v7, %v1953_v6 }
 0x949   :  { %2205 = vmatmul.mubr.msk.f32.vlgmr.msra.gmra.mrb[10].mxu1 %vm28_vm2, %v2549_v19  ;;  %v803_v19 = vld [vmem:[%s3099_s1 + $0x108] sm:$0xff] }
 0x94a   :  { %2230 = vmatprep.mubr.msk.f32.mxu1 %vm2478_vm0, %v2479_v5  ;;  %v2359_v12 = vpack.c.bf16 %v803_v19, %v802_v11  ;;  %2381 = vmatpush3.bf16.msra.mxu1 %v2380_v15  ;;  %v1955_v11 = vld [vmem:[%s3099_s1 + $0x198] sm:$0xff]  ;;  %v1956_v19 = vld [vmem:[%s3099_s1 + $0x1a0] sm:$0xff] }
 0x94b   :  { %2382 = vmatprep.subr.bf16.mxu1 %v2477_v1  ;;  %v2392_v13 = vpack.c.bf16 %v1956_v19, %v1955_v11 }
 0x94c   :  { %2360 = vmatpush3.bf16.msra.mxu0 %v2359_v12 }
 0x94d   :  { %2367 = vmatprep.subr.bf16.mxu0 %v2477_v1 }
 0xa14   :  { %v793_v17 = vpop.f32.mrb[8].mxu1 }
 0xa15   :  { %v794_v20 = vadd.f32 %v793_v17, %v2697_v44  ;;  %v2184_v21 = vpop.f32.mrb[9].mxu1 }
 0xa17   :  { %v798_v22 = vadd.f32 %v797_v18, %v794_v20 }
 0xa19   :  { %2445 = vtanh.f32 %v798_v22  ;;  %v1963_v22 = vld [vmem:[%s3099_s1 + $0x229] sm:$0x1] }
 0xa1c   :  { %v980_v23 = vpop.f32.mrb[10].mxu1 }
 0xa1d   :  { %v2206_v25 = vpop.f32.mrb[11].mxu1  ;;  %2231 = vmatmul.mubr.msk.f32.vlgmr.msra.gmra.mrb[12].mxu1 %vm187_vm4, %v980_v23  ;;  %vm1787_vm4 = vcmp.eq.s32.totalorder %v2519_v8, 2 }
 0xa1e   :  { %2241 = vmatprep.mubr.msk.f32.mxu1 %vm2478_vm0, %v2479_v5  ;;  %2384 = vmatpush3.bf16.msra.mxu1 %v2383_v2 }
 0xa1f   :  { %2385 = vmatprep.subr.bf16.mxu1 %v2477_v1 }
 0xa22   :  { %2387 = vmatpush3.bf16.msra.mxu1 %v2386_v4 }
 0xa23   :  { %v2446_v31 = vpop.eup %2445  ;;  %2388 = vmatprep.subr.bf16.mxu1 %v2477_v1 }
 0xa24   :  { %908 = vst.msk [vmem:[%s3102_s3 + $0x9] sm:$0x1] %vm878_vm5, %v2446_v31  ;;  %2194 = vmatmul.mubr.msk.f32.vlgmr.msra.gmra.mrb[8].mxu0 %vm28_vm2, %v2446_v31 }
 0xa25   :  { %2369 = vmatpush3.bf16.msra.mxu0 %v2368_v28  ;;  %2223 = vmatprep.mubr.msk.f32.mxu0 %vm2478_vm0, %v2479_v5 }
 0xa26   :  { %2370 = vmatprep.subr.bf16.mxu0 %v2477_v1  ;;  %2242 = vmatmul.mubr.msk.f32.vlgmr.msra.gmra.mrb[14].mxu1 %vm28_vm2, %v1952_v9 }
 0xa27   :  { %2390 = vmatpush3.bf16.msra.mxu1 %v2389_v10  ;;  %2252 = vmatprep.mubr.msk.f32.mxu1 %vm2478_vm0, %v2479_v5 }
 0xa28   :  { %2391 = vmatprep.subr.bf16.mxu1 %v2477_v1 }
 0xa29   :  { %2372 = vmatpush3.bf16.msra.mxu0 %v2371_v32 }
 0xa2a   :  { %2373 = vmatprep.subr.bf16.mxu0 %v2477_v1 }
 0xa2b   :  { %2393 = vmatpush3.bf16.msra.mxu1 %v2392_v13 }
 0xa2c   :  { %2266 = vmatprep.subr.mxu1 %v2479_v5 }
 0xa2d   :  { %2375 = vmatpush3.bf16.msra.mxu0 %v2374_v36 }
 0xa2e   :  { %2376 = vmatprep.subr.bf16.mxu0 %v2477_v1 }
 0xa31   :  { %2378 = vmatpush3.bf16.msra.mxu0 %v2377_v39  ;;  %v1967_v39 = vld [vmem:[%s3101_s2 + $0x40] sm:$0xff] }
 0xa32   :  { %2394 = vmatprep.subr.bf16.mxu0 %v2477_v1 }
 0xa34   :  { %2224 = vmatmul.mubr.msk.f32.vlgmr.msra.gmra.mrb[10].mxu0 %vm113_vm3, %v1936_v40  ;;  %v1968_v40 = vld [vmem:[%s3101_s2 + $0x48] sm:$0xff] }
 0xa35   :  { %2263 = vmatprep.mubr.msk.f32.mxu0 %vm2478_vm0, %v2479_v5 }
 0xaf0   :  { %v1138_v41 = vpop.f32.mrb[12].mxu1 }
 0xaf1   :  { %v2232_v42 = vpop.f32.mrb[13].mxu1 }
 0xaf2   :  { %v2395_v42 = vpack.c.bf16 %v1968_v40, %v1967_v39  ;;  %v1988_v39 = vld [vmem:[%s3099_s1 + $0x22b] sm:$0x1] }
 0xaf4   :  { %2396 = vmatpush3.bf16.msra.mxu0 %v2395_v42 }
 0xaf5   :  { %2397 = vmatprep.subr.bf16.mxu0 %v2477_v1 }
 0xaf7   :  { %v2818_v43 = vpop.f32.mrb[8].mxu0 }
 0xaf8   :  { %v2195_v44 = vpop.f32.mrb[9].mxu0 }
 0xaf9   :  { %v1251_v17 = vpop.f32.mrb[14].mxu1  ;;  %v1970_v44 = vld [vmem:[%s3101_s2 + $0x58] sm:$0xff] }
 0xafa   :  { %v2243_v18 = vpop.f32.mrb[15].mxu1 }
 0xb07   :  { %v1065_v45 = vpop.f32.mrb[10].mxu0 }
 0xb08   :  { %v1139_v47 = vadd.f32 %v1138_v41, %v1065_v45  ;;  %v2225_v48 = vpop.f32.mrb[11].mxu0  ;;  %v1969_v41 = vld [vmem:[%s3101_s2 + $0x50] sm:$0xff] }
 0xb09   :  { %v2398_v45 = vpack.c.bf16 %v1970_v44, %v1969_v41 }
 0xb0a   :  { %v1143_v49 = vadd.f32 %v1949_v46, %v1139_v47 }
 0xb0b   :  { %2399 = vmatpush3.bf16.msra.mxu0 %v2398_v45 }
 0xb0c   :  { %2447 = vtanh.f32 %v1143_v49  ;;  %v1951_v51 = vmul.f32 -1.442695, %v1143_v49  ;;  %2400 = vmatprep.subr.bf16.mxu0 %v2477_v1  ;;  %v1977_v49 = vld [vmem:[%s3099_s1 + $0x1e8] sm:$0xff] }
 0xb0e   :  { %2449 = vpow2.f32 %v1951_v51 }
 0xb16   :  { %v2448_v50 = vpop.eup %2447 }
 0xb17   :  { %1158 = vrot.lane.b32.xlu0 %v2448_v50, %s2480_s18  ;;  %v1978_v50 = vld [vmem:[%s3099_s1 + $0x1f0] sm:$0xff] }
 0xb18   :  { %v2450_v52 = vpop.eup %2449  ;;  %v2401_v51 = vpack.c.bf16 %v1978_v50, %v1977_v49 }
 0xb19   :  { %v1148_v53 = vadd.f32 1.0, %v2450_v52  ;;  %v1979_v52 = vld [vmem:[%s3099_s1 + $0x1f8] sm:$0xff] }
 0xb1b   :  { %2451 = vrcp.f32 %v1148_v53  ;;  %v1980_v53 = vld [vmem:[%s3099_s1 + $0x200] sm:$0xff] }
 0xb25   :  { %v2452_v54 = vpop.eup %2451 }
 0xb26   :  { %v1156_v59 = vmul.f32 %v2452_v54, %v1154_v58 }
 0xb89   :  { %v1159_v55 = vpop.permute.xlu0 %1158 }
 0xb8a   :  { %v1161_v56 = vmul.f32 %v2452_v54, %v1159_v55  ;;  %v2404_v55 = vpack.c.bf16 %v1980_v53, %v1979_v52 }
 0xb8c   :  { %1163 = vrot.lane.b32.xlu0 %v1161_v56, %s2481_s21  ;;  %v804_v56 = vld [vmem:[%s3099_s1 + $0x113] sm:$0x1] }
 0xbfe   :  { %v1164_v60 = vpop.permute.xlu0 %1163 }
 0xbff   :  { %v1166_v61 = vadd.f32 %v1164_v60, %v1156_v59  ;;  %v875_v59 = vadd.f32 %v2818_v43, %v804_v56 }
 0xc01   :  { %2453 = vtanh.f32 %v1166_v61  ;;  %v879_v62 = vsel %vm878_vm5, %v875_v59, -inf }
 0xc0b   :  { %v2454_v12 = vpop.eup %2453 }
 0xc0c   :  { %1169 = vrot.lane.b32.xlu1 %v2454_v12, %s2480_s18  ;;  %v1966_v12 = vld [vmem:[%s3101_s2 + $0x38] sm:$0xff] }
 0xc7e   :  { %v1170_v14 = vpop.permute.xlu1 %1169 }
 0xc7f   :  { %v1172_v15 = vmul.f32 %v2452_v54, %v1170_v14  ;;  %v1973_v14 = vld [vmem:[%s3099_s1 + $0x1c8] sm:$0xff] }
 0xc81   :  { %1256 = vrot.lane.b32.xlu0 %v1172_v15, %s2481_s21  ;;  %v1974_v15 = vld [vmem:[%s3099_s1 + $0x1d0] sm:$0xff] }
 0xc85   :  { %1341 = vrot.lane.b32.xlu0 %v1964_v16, %s2481_s21 }
 0xcf3   :  { %v1257_v20 = vpop.permute.xlu0 %1256 }
 0xcf4   :  { %1772 = vst.msk [vmem:[%s3102_s3 + $0xa] sm:$0x1] %vm878_vm5, %v1257_v20  ;;  %2253 = vmatmul.mubr.msk.f32.vlgmr.msra.gmra.mrb[16].mxu1 %vm28_vm2, %v1257_v20  ;;  %v1975_v20 = vld [vmem:[%s3099_s1 + $0x1d8] sm:$0xff] }
 0xcf5   :  { %2268 = vmatprep.mubr.msk.f32.mxu1 %vm2478_vm0, %v2479_v5  ;;  %1773 = vst.msk [vmem:[%s3102_s3 + $0xa] sm:$0x1] %vm895_vm6, %v1166_v61  ;;  %2267 = vmatpush3.msra.mxu1 %v1966_v12 }
 0xcf6   :  { %2406 = vmatprep.subr.bf16.mxu1 %v2477_v1 }
 0xcf7   :  { %v1342_v35 = vpop.permute.xlu0 %1341 }
 0xdc7   :  { %v1326_v21 = vpop.f32.mrb[16].mxu1 }
 0xdc8   :  { %v1327_v23 = vadd.f32 %v1326_v21, %v1251_v17  ;;  %v2254_v25 = vpop.f32.mrb[17].mxu1  ;;  %v2407_v17 = vpack.c.bf16 %v1974_v15, %v1973_v14  ;;  %v1976_v21 = vld [vmem:[%s3099_s1 + $0x1e0] sm:$0xff] }
 0xdca   :  { %v1331_v26 = vadd.f32 %v1963_v22, %v1327_v23  ;;  %v2410_v23 = vpack.c.bf16 %v1976_v21, %v1975_v20 }
 0xdcc   :  { %2455 = vtanh.f32 %v1331_v26  ;;  %v1965_v28 = vmul.f32 -1.442695, %v1331_v26 }
 0xdce   :  { %2457 = vpow2.f32 %v1965_v28 }
 0xdd6   :  { %v2456_v27 = vpop.eup %2455 }
 0xdd7   :  { %1346 = vrot.lane.b32.xlu1 %v2456_v27, %s2480_s18 }
 0xdd8   :  { %v2458_v29 = vpop.eup %2457 }
 0xdd9   :  { %v1336_v30 = vadd.f32 1.0, %v2458_v29  ;;  %v1986_v29 = vld [vmem:[%s3099_s1 + $0x218] sm:$0xff] }
 0xddb   :  { %2459 = vrcp.f32 %v1336_v30  ;;  %v1987_v30 = vld [vmem:[%s3099_s1 + $0x220] sm:$0xff] }
 0xde5   :  { %v2460_v31 = vpop.eup %2459 }
 0xde6   :  { %v1344_v36 = vmul.f32 %v2460_v31, %v1342_v35 }
 0xe49   :  { %v1347_v32 = vpop.permute.xlu1 %1346 }
 0xe4a   :  { %v1349_v34 = vmul.f32 %v2460_v31, %v1347_v32 }
 0xe4c   :  { %1351 = vrot.lane.b32.xlu1 %v1349_v34, %s2481_s21  ;;  %v1983_v34 = vld [vmem:[%s3099_s1 + $0x22a] sm:$0x1] }
 0xebe   :  { %v1352_v37 = vpop.permute.xlu1 %1351 }
 0xebf   :  { %v2881_v38 = vadd.f32 %v1352_v37, %v1344_v36 }
 0xec1   :  { %2461 = vtanh.f32 %v2881_v38 }
 0xecb   :  { %v2462_v46 = vpop.eup %2461 }
 0xecc   :  { %1357 = vrot.lane.b32.xlu0 %v2462_v46, %s2480_s18 }
 0xf3e   :  { %v1358_v47 = vpop.permute.xlu0 %1357 }
 0xf3f   :  { %v2899_v48 = vmul.f32 %v2460_v31, %v1358_v47  ;;  %v2416_v31 = vpack.c.bf16 %v1987_v30, %v1986_v29 }
 0xf41   :  { %1367 = vrot.lane.b32.xlu1 %v2899_v48, %s2481_s21 }
 0xfb3   :  { %v1368_v54 = vpop.permute.xlu1 %1367 }
 0xfb4   :  { %2264 = vmatmul.mubr.msk.f32.vlgmr.msra.gmra.mrb[12].mxu0 %vm28_vm2, %v1368_v54 }
 0xfb5   :  { %2402 = vmatpush3.bf16.msra.mxu0 %v2401_v51  ;;  %2279 = vmatprep.mubr.msk.f32.mxu0 %vm2478_vm0, %v2479_v5 }
 0xfb6   :  { %2403 = vmatprep.subr.bf16.mxu0 %v2477_v1 }
 0xfb9   :  { %2405 = vmatpush3.bf16.msra.mxu0 %v2404_v55 }
 0xfba   :  { %2412 = vmatprep.subr.bf16.mxu0 %v2477_v1 }
 0xfbc   :  { %2280 = vmatmul.mubr.msk.f32.vlgmr.msra.gmra.mrb[14].mxu0 %vm28_vm2, %v1368_v54 }
 0xfbd   :  { %2301 = vmatprep.mubr.msk.f32.mxu0 %vm2478_vm0, %v2479_v5 }
0x1087   :  { %v1437_v58 = vpop.f32.mrb[12].mxu0 }
0x1088   :  { %v2265_v60 = vpop.f32.mrb[13].mxu0  ;;  %v1441_v61 = vsel %vm560_vm7, %v1437_v58, -inf }
0x1089   :  { %1442 = vmax.xlane.f32.xlu0 %v1441_v61 }
0x108d   :  { %880 = vmax.xlane.f32.xlu0 %v879_v62 }
0x108f   :  { %v1599_v63 = vpop.f32.mrb[14].mxu0 }
0x1090   :  { %v2281_v0 = vpop.f32.mrb[15].mxu0 }
0x1116   :  { %v1443_v2 = vpop.xlane.xlu0 %1442 }
0x1117   :  { %v1444_v3 = vsub.f32 %v1437_v58, %v1443_v2 }
0x1119   :  { %v1445_v4 = vmul.f32 1.442695, %v1444_v3 }
0x111a   :  { %v881_v6 = vpop.xlane.xlu0 %880 }
0x111b   :  { %2463 = vpow2.f32 %v1445_v4  ;;  %v2929_v7 = vsub.f32 %v875_v59, %v881_v6 }
0x111d   :  { %v883_v9 = vmul.f32 1.442695, %v2929_v7 }
0x111f   :  { %2465 = vpow2.f32 %v883_v9 }
0x1125   :  { %v2464_v43 = vpop.eup %2463 }
0x1126   :  { %v1447_v10 = vsel %vm560_vm7, %v2464_v43, 0.0 }
0x1127   :  { %1448 = vadd.xlane.f32.xlu1 %v1447_v10 }
0x1129   :  { %v2466_v11 = vpop.eup %2465 }
0x112a   :  { %v885_v19 = vsel %vm878_vm5, %v2466_v11, 0.0 }
0x112b   :  { %886 = vadd.xlane.f32.xlu1 %v885_v19 }
0x11b4   :  { %v1449_v13 = vpop.xlane.xlu1 %1448 }
0x11b5   :  { %2467 = vrcp.f32 %v1449_v13 }
0x11b8   :  { %v887_v51 = vpop.xlane.xlu1 %886 }
0x11bf   :  { %v2468_v16 = vpop.eup %2467 }
0x11c0   :  { %v1451_v18 = vmul.f32 %v2468_v16, %v2464_v43 }
0x11c2   :  { %v1770_v22 = vadd.f32 %v1451_v18, %v2710_v57  ;;  %2269 = vmatmul.mubr.msk.f32.vlgmr.msra.gmra.mrb[18].mxu1 %vm572_vm8, %v1451_v18  ;;  %v1984_v57 = vld [vmem:[%s3099_s1 + $0x208] sm:$0xff] }
0x11c3   :  { %2408 = vmatpush3.bf16.msra.mxu1 %v2407_v17  ;;  %2290 = vmatprep.mubr.msk.f32.mxu1 %vm2478_vm0, %v2479_v5  ;;  %v1985_v5 = vld [vmem:[%s3099_s1 + $0x210] sm:$0xff]  ;;  %s2483_s1 = smov 96  }
0x11c4   :  { %v1785_v25 = vmul.f32 0.5, %v1770_v22  ;;  %2409 = vmatprep.subr.bf16.mxu1 %v2477_v1  ;;  %v2413_v28 = vpack.c.bf16 %v1985_v5, %v1984_v57 }
0x11c6   :  { %1786 = vst.msk [vmem:[%s3102_s3] sm:$0x1] %vm560_vm7, %v1785_v25  ;;  %2414 = vmatpush3.bf16.msra.mxu0 %v2413_v28  ;;  %vm1789_vm7 = vcmp.eq.s32.totalorder %v2519_v8, 3 }
0x11c7   :  { %2411 = vmatpush3.bf16.msra.mxu1 %v2410_v23  ;;  %2415 = vmatprep.subr.bf16.mxu0 %v2477_v1 }
0x11ca   :  { %2417 = vmatpush3.bf16.msra.mxu0 %v2416_v31 }
0x1295   :  { %v1521_v26 = vpop.f32.mrb[18].mxu1 }
0x1296   :  { %v2270_v27 = vpop.f32.mrb[19].mxu1  ;;  %2291 = vmatmul.mubr.msk.f32.vlgmr.msra.gmra.mrb[20].mxu1 %vm28_vm2, %v1521_v26 }
0x1369   :  { %v1672_v32 = vpop.f32.mrb[20].mxu1 }
0x136a   :  { %v1673_v35 = vadd.f32 %v1672_v32, %v1599_v63  ;;  %v2292_v36 = vpop.f32.mrb[21].mxu1 }
0x136c   :  { %v1677_v37 = vadd.f32 %v1983_v34, %v1673_v35 }
0x136e   :  { %2469 = vtanh.f32 %v1677_v37 }
0x1378   :  { %v2470_v1 = vpop.eup %2469 }
0x1379   :  { %1783 = vst.msk [vmem:[%s3102_s3 + $0xb] sm:$0x1] %vm878_vm5, %v2470_v1  ;;  %2302 = vmatmul.mubr.msk.f32.vlgmr.msra.gmra.mrb[16].mxu0 %vm28_vm2, %v2470_v1 }
0x144c   :  { %v1753_v40 = vpop.f32.mrb[16].mxu0 }
0x144d   :  { %v1754_v41 = vadd.f32 %v1988_v39, %v1753_v40  ;;  %v2303_v42 = vpop.f32.mrb[17].mxu0 }
0x144f   :  { %v1757_v44 = vsel %vm878_vm5, %v1754_v41, -inf }
0x1450   :  { %1758 = vmax.xlane.f32.xlu0 %v1757_v44 }
0x14dd   :  { %v1759_v45 = vpop.xlane.xlu0 %1758 }
0x14de   :  { %v1760_v46 = vsub.f32 %v1754_v41, %v1759_v45 }
0x14e0   :  { %v1761_v47 = vmul.f32 1.442695, %v1760_v46 }
0x14e2   :  { %2471 = vpow2.f32 %v1761_v47 }
0x14e3   :  { %2473 = vlog2.f32 %v887_v51 }
0x14ec   :  { %v2472_v49 = vpop.eup %2471 }
0x14ed   :  { %v1763_v50 = vsel %vm878_vm5, %v2472_v49, 0.0  ;;  %v2474_v53 = vpop.eup %2473 }
0x14ee   :  { %1764 = vadd.xlane.f32.xlu0 %v1763_v50  ;;  %v889_v54 = vmul.f32 0.6931472, %v2474_v53 }
0x14f0   :  { %v890_v58 = vsub.f32 %v2929_v7, %v889_v54 }
0x157b   :  { %v1765_v52 = vpop.xlane.xlu0 %1764 }
0x157c   :  { %2475 = vlog2.f32 %v1765_v52 }
0x1586   :  { %v2476_v55 = vpop.eup %2475 }
0x1587   :  { %v1767_v56 = vmul.f32 0.6931472, %v2476_v55 }
0x1589   :  { %v1768_v59 = vsub.f32 %v1760_v46, %v1767_v56 }
0x158b   :  { %v1769_v60 = vadd.f32 %v1768_v59, %v890_v58 }
0x158d   :  { %v1784_v61 = vmul.f32 0.5, %v1769_v60  ;;  %v2482_v60 = vmov 0.5  }
0x158f   :  { %v1791_v62 = vsel %vm878_vm5, %v1784_v61, -inf }
0x1590   :  { %1792 = vmax.xlane.f32.xlu1 %v1791_v62 }
0x161d   :  { %v2988_v63 = vpop.xlane.xlu1 %1792 }
0x161e   :  { %vm1794_vm9 = vcmp.eq.f32.partialorder %v1784_v61, %v2988_v63 }
0x161f   :  { %v1795_v0 = vsel %vm1794_vm9, %v2519_v8, 32  ;;  %vm900_vm9 = vcmask 778752  }
0x1620   :  { %v1796_v2 = vsel %vm878_vm5, %v1795_v0, 2147483647 }
0x1621   :  { %v1798_v3 = vshra.s32 %v1796_v2, 16  ;;  %v1797_v6 = vand.u32 65535, %v1796_v2 }
0x1623   :  { %v1800_v4 = vcvt.s32.f32 %v1798_v3  ;;  %v1799_v7 = vcvt.s32.f32 %v1797_v6 }
0x1625   :  { %1801 = vmin.xlane.f32.xlu0 %v1800_v4 }
0x16b2   :  { %v1802_v9 = vpop.xlane.xlu0 %1801 }
0x16b3   :  { %vm1803_vm10 = vcmp.eq.f32.partialorder %v1800_v4, %v1802_v9  ;;  %v1808_v10 = vcvt.f32.s32 %v1802_v9 }
0x16b4   :  { %v1804_v43 = vsel %vm1803_vm10, %v1799_v7, inf  ;;  %vm906_vm10 = vcmask 1041152  }
0x16b5   :  { %1805 = vmin.xlane.f32.xlu1 %v1804_v43  ;;  %v1809_v19 = vshll.u32 %v1808_v10, 16 }
0x1742   :  { %v1806_v11 = vpop.xlane.xlu1 %1805 }
0x1743   :  { %v1807_v12 = vcvt.f32.s32 %v1806_v11 }
0x1745   :  { %v2993_v13 = vadd.s32 %v1809_v19, %v1807_v12 }
0x1747   :  { %vm1811_vm11 = vcmp.eq.s32.totalorder %v2519_v8, %v2993_v13  ;;  %v1819_v29 = vcvt.s32.f32 %v2993_v13 }
0x1748   :  { %v1821_v14 = vsel %vm1811_vm11, -inf, %v1784_v61  ;;  %v1788_v61 = vsel %vm1787_vm4, 0.0, %v2482_v60 }
0x1749   :  { %v1822_v15 = vsel %vm878_vm5, %v1821_v14, -inf  ;;  %v1820_v34 = vsel %vm1816_vm14, %v1819_v29, 0.0  ;;  %v1790_v2 = vsel %vm1789_vm7, 0.25, %v1788_v61 }
0x174a   :  { %1823 = vmax.xlane.f32.xlu0 %v1822_v15  ;;  %v1812_v4 = vsel %vm1811_vm11, %v1790_v2, 0.0 }
0x174b   :  { %v1813_v6 = vsel %vm878_vm5, %v1812_v4, 0.0 }
0x17d7   :  { %v3001_v16 = vpop.xlane.xlu0 %1823 }
0x17d8   :  { %vm1825_vm12 = vcmp.eq.f32.partialorder %v1821_v14, %v3001_v16 }
0x17d9   :  { %v1826_v17 = vsel %vm1825_vm12, %v2519_v8, 32 }
0x17da   :  { %v1827_v18 = vsel %vm878_vm5, %v1826_v17, 2147483647 }
0x17db   :  { %v1829_v20 = vshra.s32 %v1827_v18, 16  ;;  %v1828_v22 = vand.u32 65535, %v1827_v18 }
0x17dd   :  { %v1831_v21 = vcvt.s32.f32 %v1829_v20  ;;  %v1830_v25 = vcvt.s32.f32 %v1828_v22 }
0x17df   :  { %1832 = vmin.xlane.f32.xlu1 %v1831_v21 }
0x186c   :  { %v1833_v23 = vpop.xlane.xlu1 %1832 }
0x186d   :  { %vm1834_vm13 = vcmp.eq.f32.partialorder %v1831_v21, %v1833_v23  ;;  %v1839_v27 = vcvt.f32.s32 %v1833_v23 }
0x186e   :  { %v1835_v26 = vsel %vm1834_vm13, %v1830_v25, inf }
0x186f   :  { %1836 = vmin.xlane.f32.xlu0 %v1835_v26  ;;  %v1840_v5 = vshll.u32 %v1839_v27, 16 }
0x18fc   :  { %v1837_v57 = vpop.xlane.xlu0 %1836 }
0x18fd   :  { %v1838_v28 = vcvt.f32.s32 %v1837_v57 }
0x18ff   :  { %v3007_v30 = vadd.s32 %v1840_v5, %v1838_v28 }
0x1901   :  { %v1850_v31 = vcvt.s32.f32 %v3007_v30  ;;  %vm1842_vm0 = vcmp.eq.s32.totalorder %v2519_v8, %v3007_v30 }
0x1902   :  { %v1852_v32 = vsel %vm1842_vm0, -inf, %v1821_v14  ;;  %v1843_v12 = vsel %vm1842_vm0, %v1790_v2, 0.0 }
0x1903   :  { %v1853_v35 = vsel %vm878_vm5, %v1852_v32, -inf  ;;  %v1851_v36 = vsel %vm1847_vm15, %v1850_v31, %v1820_v34  ;;  %v1844_v14 = vsel %vm878_vm5, %v1843_v12, 0.0 }
0x1904   :  { %1854 = vmax.xlane.f32.xlu1 %v1853_v35 }
0x1991   :  { %v3022_v37 = vpop.xlane.xlu1 %1854 }
0x1992   :  { %vm1856_vm1 = vcmp.eq.f32.partialorder %v1852_v32, %v3022_v37 }
0x1993   :  { %v1857_v1 = vsel %vm1856_vm1, %v2519_v8, 32 }
0x1994   :  { %v1858_v39 = vsel %vm878_vm5, %v1857_v1, 2147483647 }
0x1995   :  { %v1860_v40 = vshra.s32 %v1858_v39, 16  ;;  %v1859_v42 = vand.u32 65535, %v1858_v39 }
0x1997   :  { %v1862_v41 = vcvt.s32.f32 %v1860_v40  ;;  %v1861_v45 = vcvt.s32.f32 %v1859_v42 }
0x1999   :  { %1863 = vmin.xlane.f32.xlu0 %v1862_v41 }
0x1a26   :  { %v1864_v44 = vpop.xlane.xlu0 %1863 }
0x1a27   :  { %vm1865_vm2 = vcmp.eq.f32.partialorder %v1862_v41, %v1864_v44  ;;  %v1870_v47 = vcvt.f32.s32 %v1864_v44 }
0x1a28   :  { %v1866_v46 = vsel %vm1865_vm2, %v1861_v45, inf }
0x1a29   :  { %1867 = vmin.xlane.f32.xlu1 %v1866_v46  ;;  %v1871_v50 = vshll.u32 %v1870_v47, 16 }
0x1ab6   :  { %v1868_v49 = vpop.xlane.xlu1 %1867 }
0x1ab7   :  { %v1869_v51 = vcvt.f32.s32 %v1868_v49 }
0x1ab9   :  { %v1872_v52 = vadd.s32 %v1871_v50, %v1869_v51 }
0x1abb   :  { %v1880_v53 = vcvt.s32.f32 %v1872_v52  ;;  %vm1873_vm3 = vcmp.eq.s32.totalorder %v2519_v8, %v1872_v52 }
0x1abc   :  { %v1882_v54 = vsel %vm1873_vm3, -inf, %v1852_v32  ;;  %v1874_v9 = vsel %vm1873_vm3, %v1790_v2, 0.0 }
0x1abd   :  { %v1883_v55 = vsel %vm878_vm5, %v1882_v54, -inf  ;;  %v1881_v56 = vsel %vm1787_vm4, %v1880_v53, %v1851_v36  ;;  %v1875_v7 = vsel %vm878_vm5, %v1874_v9, 0.0 }
0x1abe   :  { %1884 = vmax.xlane.f32.xlu0 %v1883_v55 }
0x1b4b   :  { %v1885_v58 = vpop.xlane.xlu0 %1884 }
0x1b4c   :  { %vm1886_vm6 = vcmp.eq.f32.partialorder %v1882_v54, %v1885_v58 }
0x1b4d   :  { %v1887_v59 = vsel %vm1886_vm6, %v2519_v8, 32 }
0x1b4e   :  { %v1888_v62 = vsel %vm878_vm5, %v1887_v59, 2147483647 }
0x1b4f   :  { %v1890_v0 = vshra.s32 %v1888_v62, 16  ;;  %v1889_v43 = vand.u32 65535, %v1888_v62 }
0x1b51   :  { %v1892_v3 = vcvt.s32.f32 %v1890_v0  ;;  %v1891_v11 = vcvt.s32.f32 %v1889_v43 }
0x1b53   :  { %1893 = vmin.xlane.f32.xlu1 %v1892_v3 }
0x1b57   :  { %1814 = vadd.xlane.f32.xlu1 %v1813_v6 }
0x1b5b   :  { %1876 = vadd.xlane.f32.xlu1 %v1875_v7 }
0x1b6c   :  { %897 = vrot.lane.b32.xlu1 %v2672_v33, %s2483_s1 }
0x1b70   :  { %903 = vrot.lane.b32.xlu1 %v2654_v24, %s2480_s18 }
0x1b74   :  { %1779 = vrot.lane.b32.xlu1 %v2881_v38, %s2480_s18 }
0x1be0   :  { %v1894_v10 = vpop.xlane.xlu1 %1893 }
0x1be1   :  { %vm1895_vm8 = vcmp.eq.f32.partialorder %v1892_v3, %v1894_v10  ;;  %v1900_v15 = vcvt.f32.s32 %v1894_v10 }
0x1be2   :  { %v1896_v19 = vsel %vm1895_vm8, %v1891_v11, inf }
0x1be3   :  { %1897 = vmin.xlane.f32.xlu0 %v1896_v19  ;;  %v1901_v18 = vshll.u32 %v1900_v15, 16 }
0x1be4   :  { %v1815_v13 = vpop.xlane.xlu1 %1814 }
0x1be5   :  { %v1817_v21 = vadd.f32 %v1815_v13, %v2988_v63 }
0x1be7   :  { %1845 = vadd.xlane.f32.xlu0 %v1844_v14  ;;  %v1818_v27 = vsel %vm1816_vm14, %v1817_v21, 0.0 }
0x1be8   :  { %v1877_v33 = vpop.xlane.xlu1 %1876 }
0x1be9   :  { %v1878_v57 = vadd.f32 %v1877_v33, %v3022_v37 }
0x1bec   :  { %v898_v24 = vpop.permute.xlu1 %897 }
0x1bed   :  { %901 = vst.msk [vmem:[%s3102_s3 + $0x8] sm:$0x1] %vm900_vm9, %v898_v24 }
0x1bf0   :  { %v904_v38 = vpop.permute.xlu1 %903 }
0x1bf1   :  { %907 = vst.msk [vmem:[%s3102_s3 + $0x8] sm:$0x1] %vm906_vm10, %v904_v38 }
0x1bf4   :  { %v1780_v35 = vpop.permute.xlu1 %1779 }
0x1c70   :  { %v1898_v17 = vpop.xlane.xlu0 %1897 }
0x1c71   :  { %v1899_v20 = vcvt.f32.s32 %v1898_v17 }
0x1c73   :  { %v1902_v22 = vadd.s32 %v1901_v18, %v1899_v20 }
0x1c74   :  { %v1846_v23 = vpop.xlane.xlu0 %1845 }
0x1c75   :  { %v1910_v25 = vcvt.s32.f32 %v1902_v22  ;;  %v1848_v26 = vadd.f32 %v1846_v23, %v3001_v16  ;;  %vm1903_vm11 = vcmp.eq.s32.totalorder %v2519_v8, %v1902_v22 }
0x1c76   :  { %v1904_v5 = vsel %vm1903_vm11, %v1790_v2, 0.0 }
0x1c77   :  { %v1911_v28 = vsel %vm1789_vm7, %v1910_v25, %v1881_v56  ;;  %v1849_v29 = vsel %vm1847_vm15, %v1848_v26, %v1818_v27  ;;  %v1905_v63 = vsel %vm878_vm5, %v1904_v5, 0.0 }
0x1c78   :  { %1913 = vst.msk [vmem:[%s3102_s3 + $0x2] sm:$0x1] %vm878_vm5, %v1911_v28  ;;  %1906 = vadd.xlane.f32.xlu0 %v1905_v63  ;;  %v1879_v16 = vsel %vm1787_vm4, %v1878_v57, %v1849_v29 }
0x1c8e   :  { %1774 = vrot.lane.b32.xlu0 %v2899_v48, %s2483_s1 }
0x1d05   :  { %v1907_v30 = vpop.xlane.xlu0 %1906 }
0x1d06   :  { %v1908_v31 = vadd.f32 %v1907_v30, %v1885_v58 }
0x1d08   :  { %v1909_v32 = vsel %vm1789_vm7, %v1908_v31, %v1879_v16 }
0x1d09   :  { %1912 = vst.msk [vmem:[%s3102_s3 + $0x1] sm:$0x1] %vm878_vm5, %v1909_v32  ;;  %v1775_v34 = vpop.permute.xlu0 %1774 }
0x1d0a   :  { %1777 = vst.msk [vmem:[%s3102_s3 + $0xa] sm:$0x1] %vm900_vm9, %v1775_v34 }
0x1d0b   :  { %1782 = vst.msk [vmem:[%s3102_s3 + $0xa] sm:$0x1] %vm906_vm10, %v1780_v35 }

</bundles_post_ra>
